<compile_context>
chip_gen: v7x
topology: tpu7x:2x2x1
jax: 0.10.0
libtpu: 0.0.40
codegen_flags: <defaults>
</compile_context>

<pallas_src>
import jax
import jax.numpy as jnp
from jax.experimental import pallas as pl
from jax.experimental.pallas import tpu as pltpu

EMB_DIM = 384                 # all-MiniLM-L6-v2 sentence embedding dim
N_SENT = 6
IN_DIM = EMB_DIM * N_SENT     # 2304
H1, H2, H3, OUT = 512, 256, 128, 1

# Packed small-parameter buffer layout (1, AUX_DIM), f32.  All offsets are
# multiples of 128 (lane aligned).
#   [   0 :  512]  b1  (512)
#   [ 512 :  768]  b2  (256)
#   [ 768 :  896]  b3  (128)
#   [ 896 : 1024]  w4 column as a row (128)
#   [1024 : 1025]  b4  (scalar)
#   [1152 : 1664]  s1  per-column dequant scale of W1 (512)
#   [1664 : 1920]  s2  per-column dequant scale of W2 (256)
#   [1920 : 2048]  s3  per-column dequant scale of W3 (128)
_B1_OFF = 0
_B2_OFF = H1
_B3_OFF = H1 + H2
_W4_OFF = H1 + H2 + H3
_B4_OFF = H1 + H2 + 2 * H3            # 1024
_S1_OFF = 1152
_S2_OFF = _S1_OFF + H1                # 1664
_S3_OFF = _S2_OFF + H2                # 1920
AUX_DIM = _S3_OFF + H3                # 2048, lane-aligned


def mlp_kernel(x_ref, w1_ref, w2_ref, w3_ref, aux_ref, o_ref):
    # Unpack small params (single tiny f32 buffer, lane-aligned slices).
    b1 = aux_ref[:, _B1_OFF:_B1_OFF + H1]          # (1, 512)
    b2 = aux_ref[:, _B2_OFF:_B2_OFF + H2]          # (1, 256)
    b3 = aux_ref[:, _B3_OFF:_B3_OFF + H3]          # (1, 128)
    w4_row = aux_ref[:, _W4_OFF:_W4_OFF + H3]      # (1, 128)
    b4 = aux_ref[:, _B4_OFF:_B4_OFF + 1]           # (1, 1)
    s1 = aux_ref[:, _S1_OFF:_S1_OFF + H1]          # (1, 512)
    s2 = aux_ref[:, _S2_OFF:_S2_OFF + H2]          # (1, 256)
    s3 = aux_ref[:, _S3_OFF:_S3_OFF + H3]          # (1, 128)

    # bf16 operands on the MXU, f32 accumulation.  int8 weight values are
    # exactly representable in bf16; the per-column dequant scale is applied
    # to the small (B, H) matmul output (VPU, ~free) instead of the big
    # weight tile.
    x = x_ref[...].astype(jnp.bfloat16)

    w1 = w1_ref[...].astype(jnp.bfloat16)
    h = jnp.dot(x, w1, preferred_element_type=jnp.float32) * s1 + b1
    h = jnp.maximum(h, 0.0).astype(jnp.bfloat16)

    w2 = w2_ref[...].astype(jnp.bfloat16)
    h = jnp.dot(h, w2, preferred_element_type=jnp.float32) * s2 + b2
    h = jnp.maximum(h, 0.0).astype(jnp.bfloat16)

    w3 = w3_ref[...].astype(jnp.bfloat16)
    h = jnp.dot(h, w3, preferred_element_type=jnp.float32) * s3 + b3
    h = jnp.maximum(h, 0.0)                        # (block_b, 128) f32

    # Final 128 -> 1 layer as a VPU multiply + XLU lane reduction (no N=1
    # MXU matmul).
    o = jnp.sum(h * w4_row, axis=-1, keepdims=True) + b4
    o_ref[...] = o.astype(o_ref.dtype)


def sbert_regression_mlp(x, packed_params):
    """x: (B, IN_DIM) f32 concatenated SBERT embeddings. Returns (B, 1) f32."""
    w1, w2, w3, aux = packed_params
    B = x.shape[0]

    # Batch tiling: small batches -> single block padded to a sublane (8);
    # large batches -> 256-row blocks on a 1-D grid, weights VMEM-resident
    # across grid steps (constant index_map).
    if B <= 256:
        block_b = max(8, ((B + 7) // 8) * 8)
    else:
        block_b = 256
    Bp = ((B + block_b - 1) // block_b) * block_b
    if Bp != B:
        x = jnp.pad(x, ((0, Bp - B), (0, 0)))
    n_blocks = Bp // block_b

    grid_spec = pltpu.PrefetchScalarGridSpec(
        num_scalar_prefetch=0,
        grid=(n_blocks,),
        in_specs=[
            pl.BlockSpec((block_b, IN_DIM), lambda i: (i, 0)),   # x (tiled)
            pl.BlockSpec((IN_DIM, H1), lambda i: (0, 0)),        # W1 (resident)
            pl.BlockSpec((H1, H2), lambda i: (0, 0)),            # W2 (resident)
            pl.BlockSpec((H2, H3), lambda i: (0, 0)),            # W3 (resident)
            pl.BlockSpec((1, AUX_DIM), lambda i: (0, 0)),        # aux (resident)
        ],
        out_specs=pl.BlockSpec((block_b, OUT), lambda i: (i, 0)),
    )

    # Only engage dual-TC batch split (v7x) when there is enough work to
    # amortize each core's private weight copy.
    semantics = ("parallel",) if n_blocks >= 4 else ("arbitrary",)

    out = pl.pallas_call(
        mlp_kernel,
        out_shape=jax.ShapeDtypeStruct((Bp, OUT), jnp.float32),
        grid_spec=grid_spec,
        compiler_params=pltpu.CompilerParams(dimension_semantics=semantics),
    )(x, w1, w2, w3, aux)
    return out[:B]


def init_params(key):
    """Deterministic init mimicking PyTorch Linear default (U[-1/sqrt(fan_in), ...])."""
    dims = [(IN_DIM, H1), (H1, H2), (H2, H3), (H3, OUT)]
    params = []
    keys = jax.random.split(key, 2 * len(dims))
    for i, (fan_in, fan_out) in enumerate(dims):
        bound = 1.0 / jnp.sqrt(fan_in)
        w = jax.random.uniform(keys[2 * i], (fan_in, fan_out),
                               minval=-bound, maxval=bound, dtype=jnp.float32)
        b = jax.random.uniform(keys[2 * i + 1], (fan_out,),
                               minval=-bound, maxval=bound, dtype=jnp.float32)
        params += [w, b]
    return tuple(params)


def _quantize_per_col(w):
    """Symmetric per-column int8 quantization; returns (q_int8, scale_f32)."""
    amax = jnp.max(jnp.abs(w), axis=0)
    scale = jnp.where(amax > 0, amax / 127.0, 1.0).astype(jnp.float32)
    q = jnp.clip(jnp.round(w / scale), -127, 127).astype(jnp.int8)
    return q, scale


def pack_params(params):
    """(w1,b1,...,w4,b4) f32 -> (w1_int8, w2_int8, w3_int8, aux_f32)."""
    w1, b1, w2, b2, w3, b3, w4, b4 = params
    q1, s1 = _quantize_per_col(w1)
    q2, s2 = _quantize_per_col(w2)
    q3, s3 = _quantize_per_col(w3)

    aux = jnp.zeros((1, AUX_DIM), dtype=jnp.float32)
    aux = aux.at[0, _B1_OFF:_B1_OFF + H1].set(b1)
    aux = aux.at[0, _B2_OFF:_B2_OFF + H2].set(b2)
    aux = aux.at[0, _B3_OFF:_B3_OFF + H3].set(b3)
    aux = aux.at[0, _W4_OFF:_W4_OFF + H3].set(w4.reshape(-1))
    aux = aux.at[0, _B4_OFF].set(b4.reshape(-1)[0])
    aux = aux.at[0, _S1_OFF:_S1_OFF + H1].set(s1)
    aux = aux.at[0, _S2_OFF:_S2_OFF + H2].set(s2)
    aux = aux.at[0, _S3_OFF:_S3_OFF + H3].set(s3)
    return q1, q2, q3, aux


def reference_mlp(x, packed_params):
    """f32 reference using the same quantized weights the kernel sees.

    x is rounded to bf16 (as the kernel does) so the comparison isolates
    kernel error from input quantization error.
    """
    q1, q2, q3, aux = packed_params
    b1 = aux[0, _B1_OFF:_B1_OFF + H1]
    b2 = aux[0, _B2_OFF:_B2_OFF + H2]
    b3 = aux[0, _B3_OFF:_B3_OFF + H3]
    w4 = aux[0, _W4_OFF:_W4_OFF + H3].reshape(H3, 1)
    b4 = aux[0, _B4_OFF]
    s1 = aux[0, _S1_OFF:_S1_OFF + H1]
    s2 = aux[0, _S2_OFF:_S2_OFF + H2]
    s3 = aux[0, _S3_OFF:_S3_OFF + H3]

    w1 = q1.astype(jnp.float32) * s1
    w2 = q2.astype(jnp.float32) * s2
    w3 = q3.astype(jnp.float32) * s3

    xq = x.astype(jnp.bfloat16).astype(jnp.float32)
    h = jnp.maximum(xq @ w1 + b1, 0.0)
    h = jnp.maximum(h @ w2 + b2, 0.0)
    h = jnp.maximum(h @ w3 + b3, 0.0)
    return h @ w4 + b4


if __name__ == "__main__":
    key = jax.random.PRNGKey(0)
    k_x, k_p, k_x2 = jax.random.split(key, 3)

    packed = pack_params(init_params(k_p))

    # Small batch: two "sentence lists", each already encoded & concatenated.
    B = 2
    x = jax.random.normal(k_x, (B, IN_DIM), dtype=jnp.float32)
    out = jax.block_until_ready(sbert_regression_mlp(x, packed))
    ref = reference_mlp(x, packed)
    assert out.shape == (B, 1), out.shape
    # bf16 activations inside the kernel -> relaxed tolerance vs the f32 ref.
    assert jnp.allclose(out, ref, atol=3e-2, rtol=3e-2), (
        f"mismatch (B={B}): max abs err {jnp.max(jnp.abs(out - ref))}")

    # Larger batch exercises the multi-block grid path (+ batch padding).
    B2 = 300
    x2 = jax.random.normal(k_x2, (B2, IN_DIM), dtype=jnp.float32)
    out2 = jax.block_until_ready(sbert_regression_mlp(x2, packed))
    ref2 = reference_mlp(x2, packed)
    assert out2.shape == (B2, 1), out2.shape
    assert jnp.allclose(out2, ref2, atol=3e-2, rtol=3e-2), (
        f"mismatch (B={B2}): max abs err {jnp.max(jnp.abs(out2 - ref2))}")

    print("KERNEL_OK")
</pallas_src>

<mosaic_0001>
module attributes {stable_mosaic.version = 11 : i64} {
  func.func @mlp_kernel(%arg0: i32, %arg1: memref<8x2304xf32, #tpu.memory_space<vmem>>, %arg2: memref<2304x512xi8, #tpu.memory_space<vmem>>, %arg3: memref<512x256xi8, #tpu.memory_space<vmem>>, %arg4: memref<256x128xi8, #tpu.memory_space<vmem>>, %arg5: memref<1x2048xf32, #tpu.memory_space<vmem>>, %arg6: memref<8x1xf32, #tpu.memory_space<vmem>>) attributes {dimension_semantics = [#tpu.dimension_semantics<arbitrary>], iteration_bounds = array<i64: 1>, scalar_prefetch = 0 : i64, scratch_operands = 0 : i64, tpu.core_type = #tpu.core_type<tc>, window_params = [{transform_indices = @transform_0, window_bounds = array<i64: 8, 2304>}, {pipeline_mode = #tpu.pipeline_mode<synchronous>, transform_indices = @transform_1, window_bounds = array<i64: 2304, 512>}, {pipeline_mode = #tpu.pipeline_mode<synchronous>, transform_indices = @transform_2, window_bounds = array<i64: 512, 256>}, {pipeline_mode = #tpu.pipeline_mode<synchronous>, transform_indices = @transform_3, window_bounds = array<i64: 256, 128>}, {pipeline_mode = #tpu.pipeline_mode<synchronous>, transform_indices = @transform_4, window_bounds = array<i64: 1, 2048>}, {transform_indices = @transform_5, window_bounds = array<i64: 8, 1>}]} {
    %c0 = arith.constant 0 : index
    %c0_0 = arith.constant 0 : index
    %0 = vector.load %arg5[%c0, %c0_0] : memref<1x2048xf32, #tpu.memory_space<vmem>>, vector<1x512xf32>
    %c0_1 = arith.constant 0 : index
    %c512 = arith.constant 512 : index
    %1 = vector.load %arg5[%c0_1, %c512] : memref<1x2048xf32, #tpu.memory_space<vmem>>, vector<1x256xf32>
    %c0_2 = arith.constant 0 : index
    %c768 = arith.constant 768 : index
    %2 = vector.load %arg5[%c0_2, %c768] : memref<1x2048xf32, #tpu.memory_space<vmem>>, vector<1x128xf32>
    %c0_3 = arith.constant 0 : index
    %c896 = arith.constant 896 : index
    %3 = vector.load %arg5[%c0_3, %c896] : memref<1x2048xf32, #tpu.memory_space<vmem>>, vector<1x128xf32>
    %c0_4 = arith.constant 0 : index
    %c1024 = arith.constant 1024 : index
    %4 = vector.load %arg5[%c0_4, %c1024] : memref<1x2048xf32, #tpu.memory_space<vmem>>, vector<1x1xf32>
    %c0_5 = arith.constant 0 : index
    %c1152 = arith.constant 1152 : index
    %5 = vector.load %arg5[%c0_5, %c1152] : memref<1x2048xf32, #tpu.memory_space<vmem>>, vector<1x512xf32>
    %c0_6 = arith.constant 0 : index
    %c1664 = arith.constant 1664 : index
    %6 = vector.load %arg5[%c0_6, %c1664] : memref<1x2048xf32, #tpu.memory_space<vmem>>, vector<1x256xf32>
    %c0_7 = arith.constant 0 : index
    %c1920 = arith.constant 1920 : index
    %7 = vector.load %arg5[%c0_7, %c1920] : memref<1x2048xf32, #tpu.memory_space<vmem>>, vector<1x128xf32>
    %c0_8 = arith.constant 0 : index
    %c0_9 = arith.constant 0 : index
    %8 = vector.load %arg1[%c0_8, %c0_9] : memref<8x2304xf32, #tpu.memory_space<vmem>>, vector<8x2304xf32>
    %9 = arith.truncf %8 : vector<8x2304xf32> to vector<8x2304xbf16>
    %c0_10 = arith.constant 0 : index
    %c0_11 = arith.constant 0 : index
    %10 = vector.load %arg2[%c0_10, %c0_11] : memref<2304x512xi8, #tpu.memory_space<vmem>>, vector<2304x512xi8>
    %11 = arith.sitofp %10 : vector<2304x512xi8> to vector<2304x512xbf16>
    %cst = arith.constant dense<0.000000e+00> : vector<8x512xf32>
    %12 = tpu.matmul %9, %11, %cst {dimension_numbers = #tpu.dot_dimension_numbers<[1], [0], [0], [1], [0, 0, 1, 1], [], []>} : vector<8x2304xbf16>, vector<2304x512xbf16>, vector<8x512xf32> -> vector<8x512xf32>
    %13 = vector.broadcast %5 : vector<1x512xf32> to vector<8x512xf32>
    %14 = arith.mulf %12, %13 : vector<8x512xf32>
    %15 = vector.broadcast %0 : vector<1x512xf32> to vector<8x512xf32>
    %16 = arith.addf %14, %15 : vector<8x512xf32>
    %cst_12 = arith.constant 0.000000e+00 : f32
    %17 = vector.broadcast %cst_12 : f32 to vector<8x512xf32>
    %18 = arith.maximumf %16, %17 : vector<8x512xf32>
    %19 = arith.truncf %18 : vector<8x512xf32> to vector<8x512xbf16>
    %c0_13 = arith.constant 0 : index
    %c0_14 = arith.constant 0 : index
    %20 = vector.load %arg3[%c0_13, %c0_14] : memref<512x256xi8, #tpu.memory_space<vmem>>, vector<512x256xi8>
    %21 = arith.sitofp %20 : vector<512x256xi8> to vector<512x256xbf16>
    %cst_15 = arith.constant dense<0.000000e+00> : vector<8x256xf32>
    %22 = tpu.matmul %19, %21, %cst_15 {dimension_numbers = #tpu.dot_dimension_numbers<[1], [0], [0], [1], [0, 0, 1, 1], [], []>} : vector<8x512xbf16>, vector<512x256xbf16>, vector<8x256xf32> -> vector<8x256xf32>
    %23 = vector.broadcast %6 : vector<1x256xf32> to vector<8x256xf32>
    %24 = arith.mulf %22, %23 : vector<8x256xf32>
    %25 = vector.broadcast %1 : vector<1x256xf32> to vector<8x256xf32>
    %26 = arith.addf %24, %25 : vector<8x256xf32>
    %cst_16 = arith.constant 0.000000e+00 : f32
    %27 = vector.broadcast %cst_16 : f32 to vector<8x256xf32>
    %28 = arith.maximumf %26, %27 : vector<8x256xf32>
    %29 = arith.truncf %28 : vector<8x256xf32> to vector<8x256xbf16>
    %c0_17 = arith.constant 0 : index
    %c0_18 = arith.constant 0 : index
    %30 = vector.load %arg4[%c0_17, %c0_18] : memref<256x128xi8, #tpu.memory_space<vmem>>, vector<256x128xi8>
    %31 = arith.sitofp %30 : vector<256x128xi8> to vector<256x128xbf16>
    %cst_19 = arith.constant dense<0.000000e+00> : vector<8x128xf32>
    %32 = tpu.matmul %29, %31, %cst_19 {dimension_numbers = #tpu.dot_dimension_numbers<[1], [0], [0], [1], [0, 0, 1, 1], [], []>} : vector<8x256xbf16>, vector<256x128xbf16>, vector<8x128xf32> -> vector<8x128xf32>
    %33 = vector.broadcast %7 : vector<1x128xf32> to vector<8x128xf32>
    %34 = arith.mulf %32, %33 : vector<8x128xf32>
    %35 = vector.broadcast %2 : vector<1x128xf32> to vector<8x128xf32>
    %36 = arith.addf %34, %35 : vector<8x128xf32>
    %cst_20 = arith.constant 0.000000e+00 : f32
    %37 = vector.broadcast %cst_20 : f32 to vector<8x128xf32>
    %38 = arith.maximumf %36, %37 : vector<8x128xf32>
    %39 = vector.broadcast %3 : vector<1x128xf32> to vector<8x128xf32>
    %40 = arith.mulf %38, %39 : vector<8x128xf32>
    %cst_21 = arith.constant dense<0.000000e+00> : vector<8xf32>
    %41 = vector.multi_reduction <add>, %40, %cst_21 [1] : vector<8x128xf32> to vector<8xf32>
    %42 = vector.shape_cast %41 : vector<8xf32> to vector<8x1xf32>
    %43 = vector.broadcast %4 : vector<1x1xf32> to vector<8x1xf32>
    %44 = arith.addf %42, %43 : vector<8x1xf32>
    %c0_22 = arith.constant 0 : index
    %c0_23 = arith.constant 0 : index
    %45 = vector.load %arg6[%c0_22, %c0_23] : memref<8x1xf32, #tpu.memory_space<vmem>>, vector<8x1xf32>
    tpu.vector_store %arg6[%c0_22, %c0_23], %44 {strides = array<i32>} : memref<8x1xf32, #tpu.memory_space<vmem>>, vector<8x1xf32>,
    return
  }
  func.func @transform_0(%arg0: i32) -> (i32, i32) {
    %c0_i32 = arith.constant 0 : i32
    %c0_i32_0 = arith.constant 0 : i32
    return %arg0, %c0_i32 : i32, i32
  }
  func.func @transform_1(%arg0: i32) -> (i32, i32) {
    %c0_i32 = arith.constant 0 : i32
    %c0_i32_0 = arith.constant 0 : i32
    %c0_i32_1 = arith.constant 0 : i32
    return %c0_i32, %c0_i32_0 : i32, i32
  }
  func.func @transform_2(%arg0: i32) -> (i32, i32) {
    %c0_i32 = arith.constant 0 : i32
    %c0_i32_0 = arith.constant 0 : i32
    %c0_i32_1 = arith.constant 0 : i32
    return %c0_i32, %c0_i32_0 : i32, i32
  }
  func.func @transform_3(%arg0: i32) -> (i32, i32) {
    %c0_i32 = arith.constant 0 : i32
    %c0_i32_0 = arith.constant 0 : i32
    %c0_i32_1 = arith.constant 0 : i32
    return %c0_i32, %c0_i32_0 : i32, i32
  }
  func.func @transform_4(%arg0: i32) -> (i32, i32) {
    %c0_i32 = arith.constant 0 : i32
    %c0_i32_0 = arith.constant 0 : i32
    %c0_i32_1 = arith.constant 0 : i32
    return %c0_i32, %c0_i32_0 : i32, i32
  }
  func.func @transform_5(%arg0: i32) -> (i32, i32) {
    %c0_i32 = arith.constant 0 : i32
    %c0_i32_0 = arith.constant 0 : i32
    return %arg0, %c0_i32 : i32, i32
  }
}

</mosaic_0001>

<bundles_post_ra>
// kernel: tpu_custom_call.1
= control target key start
LH: loop header
LB: loop body
LE: loop exit
PB: predicated region body
PF: predicated region fallthrough
CT: control target
= control target key end

     0   :  { %10 = vsyncpa [#allocation3], 0  ;;  %s2551_s0 = inlined_call_operand.hbm [shape: f32[8,2304], index: 0, kind: input, shape index: {}]   ;;  %s2552_s1 = inlined_call_operand.hbm [shape: s8[2304,512], index: 1, kind: input, shape index: {}]   ;;  %s2553_s2 = inlined_call_operand.hbm [shape: s8[512,256], index: 2, kind: input, shape index: {}]   ;;  %s2554_s3 = inlined_call_operand.hbm [shape: s8[256,128], index: 3, kind: input, shape index: {}]   ;;  %s2555_s4 = inlined_call_operand.hbm [shape: f32[1,2048], index: 4, kind: input, shape index: {}]   ;;  %s2556_s5 = inlined_call_operand.vmem [shape: f32[8,1], index: 5, kind: output, shape index: {}]  }
   0x1   :  { %11 = vsyncpa [#allocation5], 0 }
   0x2   :  { %12 = vsyncpa [#allocation8], 0  ;;  %s2320_s18 = smov [#allocation4]   ;;  %s2204_s22 = scalar_lea.hbm %s2552_s1, 36864 }
   0x3   :  { %s28_s19 = sshll.u32 %s2320_s18, 4  ;;  %p2205_p0 = scmp.ne.s32.totalorder %s2552_s1, %s2204_s22  ;;  %s29_s19 = int_to_ptr.vmem [resolvable:$true] %s28_s19 }
   0x4   :  { %p2208_p1 = scmp.lt.u32.totalorder %s2204_s22, %s2552_s1 }
   0x6   :  { %p2210_p2 = pnand %p2208_p1, %p2205_p0 }
   0x8   :  { %2213 = shalt.err (!%p2210_p2)
}
   0x9   :  { %s2214_s27 = scalar_lea.vmem %s29_s19, 36864  ;;  %p2219_p4 = scmp.lt.s32.totalorder %s29_s19, %s29_s19 }
   0xa   :  { %p2215_p3 = scmp.ne.s32.totalorder %s29_s19, %s2214_s27  ;;  %p2220_p5 = scmp.lt.s32.totalorder %s2214_s27, %s2214_s27 }
   0xc   :  { %p2221_p6 = por %p2220_p5, %p2219_p4 }
   0xe   :  { %p2222_p7 = pnand %p2221_p6, %p2215_p3 }
  0x10   :  { %2225 = shalt.err (!%p2222_p7)
}
  0x11   :  { %s2321_s28 = smov 512   ;;  %s2322_s29 = smov 32  }
  0x12   :  { %34 = dma.hbm_to_vmem [thread:$0]  %s2552_s1, 36864, %s29_s19, [#allocation5], %s2321_s28, %s2321_s28, %s2322_s29  }
  0x13   :  { %s2323_s7 = smov [#allocation7]   ;;  %s2226_s11 = scalar_lea.hbm %s2554_s3, 1024 }
  0x14   :  { %s52_s8 = sshll.u32 %s2323_s7, 4  ;;  %p2227_p8 = scmp.ne.s32.totalorder %s2554_s3, %s2226_s11  ;;  %s53_s8 = int_to_ptr.vmem [resolvable:$true] %s52_s8 }
  0x15   :  { %p2230_p9 = scmp.lt.u32.totalorder %s2226_s11, %s2554_s3 }
  0x17   :  { %p2232_p10 = pnand %p2230_p9, %p2227_p8 }
  0x19   :  { %2235 = shalt.err (!%p2232_p10)
}
  0x1a   :  { %s2236_s16 = scalar_lea.vmem %s53_s8, 1024  ;;  %p2241_p12 = scmp.lt.s32.totalorder %s53_s8, %s53_s8 }
  0x1b   :  { %p2237_p11 = scmp.ne.s32.totalorder %s53_s8, %s2236_s16  ;;  %p2242_p13 = scmp.lt.s32.totalorder %s2236_s16, %s2236_s16 }
  0x1d   :  { %p2243_p0 = por %p2242_p13, %p2241_p12 }
  0x1f   :  { %p2244_p1 = pnand %p2243_p0, %p2237_p11 }
  0x21   :  { %2247 = shalt.err (!%p2244_p1)
}
  0x22   :  { %s2324_s1 = smov 128   ;;  %s2325_s17 = smov 8  }
  0x23   :  { %58 = dma.hbm_to_vmem [thread:$0]  %s2554_s3, 1024, %s53_s8, [#allocation8], %s2324_s1, %s2324_s1, %s2325_s17  }
  0x24   :  { %s2326_s20 = smov [#allocation2]   ;;  %s2327_s22 = smov [#allocation6]  }
  0x25   :  { %s19_s21 = sshll.u32 %s2326_s20, 4  ;;  %s40_s23 = sshll.u32 %s2327_s22, 4  ;;  %s20_s21 = int_to_ptr.vmem [resolvable:$true] %s19_s21  ;;  %s2385_s23 = int_to_ptr.vmem [resolvable:$true] %s40_s23 }
  0x26   :  { %s2248_s26 = scalar_lea.hbm %s2551_s0, 2304 }
  0x27   :  { %p2249_p2 = scmp.ne.s32.totalorder %s2551_s0, %s2248_s26  ;;  %p2252_p3 = scmp.lt.u32.totalorder %s2248_s26, %s2551_s0 }
  0x29   :  { %p2254_p4 = pnand %p2252_p3, %p2249_p2 }
  0x2b   :  { %2257 = shalt.err (!%p2254_p4)
}
  0x2c   :  { %s2258_s3 = scalar_lea.vmem %s20_s21, 2304  ;;  %p2263_p6 = scmp.lt.s32.totalorder %s20_s21, %s20_s21 }
  0x2d   :  { %p2259_p5 = scmp.ne.s32.totalorder %s20_s21, %s2258_s3  ;;  %p2264_p7 = scmp.lt.s32.totalorder %s2258_s3, %s2258_s3 }
  0x2f   :  { %p2265_p8 = por %p2264_p7, %p2263_p6 }
  0x31   :  { %p2266_p9 = pnand %p2265_p8, %p2259_p5 }
  0x33   :  { %2269 = shalt.err (!%p2266_p9)
}
  0x34   :  { %22 = dma.hbm_to_vmem [thread:$0]  %s2551_s0, 2304, %s20_s21, [#allocation3]  }
  0x35   :  { %s2270_s10 = scalar_lea.hbm %s2553_s2, 4096 }
  0x36   :  { %p2271_p10 = scmp.ne.s32.totalorder %s2553_s2, %s2270_s10  ;;  %p2274_p11 = scmp.lt.u32.totalorder %s2270_s10, %s2553_s2 }
  0x38   :  { %p2276_p12 = pnand %p2274_p11, %p2271_p10 }
  0x3a   :  { %2279 = shalt.err (!%p2276_p12)
}
  0x3b   :  { %s2280_s15 = scalar_lea.vmem %s2385_s23, 4096  ;;  %p2285_p0 = scmp.lt.s32.totalorder %s2385_s23, %s2385_s23 }
  0x3c   :  { %p2281_p13 = scmp.ne.s32.totalorder %s2385_s23, %s2280_s15  ;;  %p2286_p1 = scmp.lt.s32.totalorder %s2280_s15, %s2280_s15 }
  0x3e   :  { %p2287_p2 = por %p2286_p1, %p2285_p0 }
  0x40   :  { %p2288_p3 = pnand %p2287_p2, %p2281_p13 }
  0x42   :  { %2291 = shalt.err (!%p2288_p3)
}
  0x43   :  { %s2328_s0 = smov 256   ;;  %s2329_s16 = smov 16  }
  0x44   :  { %46 = dma.hbm_to_vmem [thread:$0]  %s2553_s2, 4096, %s2385_s23, [#allocation5], %s2328_s0, %s2328_s0, %s2329_s16  }
  0x45   :  { %s2330_s18 = smov [#allocation9]   ;;  %s2292_s22 = scalar_lea.hbm %s2555_s4, 256 }
  0x46   :  { %s65_s19 = sshll.u32 %s2330_s18, 4  ;;  %p2293_p4 = scmp.ne.s32.totalorder %s2555_s4, %s2292_s22  ;;  %s66_s19 = int_to_ptr.vmem [resolvable:$true] %s65_s19 }
  0x47   :  { %p2296_p5 = scmp.lt.u32.totalorder %s2292_s22, %s2555_s4 }
  0x49   :  { %p2298_p6 = pnand %p2296_p5, %p2293_p4 }
  0x4b   :  { %2301 = shalt.err (!%p2298_p6)
}
  0x4c   :  { %s2302_s28 = scalar_lea.vmem %s66_s19, 256  ;;  %p2307_p8 = scmp.lt.s32.totalorder %s66_s19, %s66_s19 }
  0x4d   :  { %p2303_p7 = scmp.ne.s32.totalorder %s66_s19, %s2302_s28  ;;  %p2308_p9 = scmp.lt.s32.totalorder %s2302_s28, %s2302_s28 }
  0x4f   :  { %p2309_p10 = por %p2308_p9, %p2307_p8 }
  0x51   :  { %p2310_p11 = pnand %p2309_p10, %p2303_p7 }
  0x53   :  { %2313 = shalt.err (!%p2310_p11)
}
  0x54   :  { %68 = dma.hbm_to_vmem [thread:$0]  %s2555_s4, 256, %s66_s19, [#allocation8]  }
  0x55   :  { %2314 = dma.done.wait [#allocation3], 2304  }
  0x56   :  { %2315 = vsyncadd [#allocation3], 4294964992 }
  0x57   :  { %2316 = dma.done.wait [#allocation5], 40960  }
  0x58   :  { %2317 = vsyncadd [#allocation5], 4294926336 }
  0x59   :  { %2318 = dma.done.wait [#allocation8], 1280  }
  0x5a   :  { %2319 = vsyncadd [#allocation8], 4294966016  ;;  %v130_v0 = vld [vmem:[#allocation4 + $0x8] sm:$0xff]  ;;  %v129_v2 = vld [vmem:[#allocation4] sm:$0xff]  ;;  %vm2092_vm0 = vcmask 7168  }
  0x5b   :  { %v162_v1 = vld [vmem:[#allocation4 + $0x108] sm:$0xff]  ;;  %v418_v3 = vunpack.c.l.s8.bf16 %v130_v0  ;;  %v422_v4 = vunpack.c.h.s8.bf16 %v130_v0  ;;  %v161_v7 = vld [vmem:[#allocation4 + $0x100] sm:$0xff]  ;;  %v417_v8 = vunpack.c.l.s8.bf16 %v129_v2  ;;  %v421_v12 = vunpack.c.h.s8.bf16 %v129_v2  ;;  %v94_v30 = vld [vmem:[#allocation2 + $0x8] sm:$0xff] }
  0x5c   :  { %v482_v5 = vunpack.c.l.s8.bf16 %v162_v1  ;;  %v486_v6 = vunpack.c.h.s8.bf16 %v162_v1  ;;  %v481_v9 = vunpack.c.l.s8.bf16 %v161_v7  ;;  %v134_v10 = vld [vmem:[#allocation4 + $0x28] sm:$0xff]  ;;  %v485_v13 = vunpack.c.h.s8.bf16 %v161_v7  ;;  %v133_v16 = vld [vmem:[#allocation4 + $0x20] sm:$0xff] }
  0x5d   :  { %v166_v11 = vld [vmem:[#allocation4 + $0x128] sm:$0xff]  ;;  %993 = vmatprep.subr.bf16.mxu1 %v418_v3  ;;  %v426_v14 = vunpack.c.l.s8.bf16 %v134_v10  ;;  %v165_v17 = vld [vmem:[#allocation4 + $0x120] sm:$0xff]  ;;  %v425_v18 = vunpack.c.l.s8.bf16 %v133_v16  ;;  %v430_v20 = vunpack.c.h.s8.bf16 %v134_v10  ;;  %v429_v24 = vunpack.c.h.s8.bf16 %v133_v16 }
  0x5e   :  { %1034 = vmatprep.subr.bf16.mxu0 %v482_v5  ;;  %994 = vmatpush1.bf16.msra.mxu1 %v417_v8  ;;  %v490_v15 = vunpack.c.l.s8.bf16 %v166_v11  ;;  %v489_v19 = vunpack.c.l.s8.bf16 %v165_v17  ;;  %v494_v21 = vunpack.c.h.s8.bf16 %v166_v11  ;;  %v138_v22 = vld [vmem:[#allocation4 + $0x48] sm:$0xff]  ;;  %v493_v25 = vunpack.c.h.s8.bf16 %v165_v17  ;;  %v137_v28 = vld [vmem:[#allocation4 + $0x40] sm:$0xff] }
  0x5f   :  { %1035 = vmatpush1.bf16.msra.mxu0 %v481_v9  ;;  %995 = vmatprep.subr.bf16.mxu1 %v422_v4  ;;  %v170_v23 = vld [vmem:[#allocation4 + $0x148] sm:$0xff]  ;;  %v434_v26 = vunpack.c.l.s8.bf16 %v138_v22  ;;  %v169_v29 = vld [vmem:[#allocation4 + $0x140] sm:$0xff]  ;;  %v433_v32 = vunpack.c.l.s8.bf16 %v137_v28  ;;  %v438_v34 = vunpack.c.h.s8.bf16 %v138_v22  ;;  %v2428_v36 = vpack.c.bf16 %v94_v30, %v94_v30 }
  0x60   :  { %1036 = vmatprep.subr.bf16.mxu0 %v486_v6  ;;  %v498_v27 = vunpack.c.l.s8.bf16 %v170_v23  ;;  %v96_v31 = vld [vmem:[#allocation2 + $0x18] sm:$0xff]  ;;  %v497_v33 = vunpack.c.l.s8.bf16 %v169_v29  ;;  %v502_v35 = vunpack.c.h.s8.bf16 %v170_v23  ;;  %v437_v40 = vunpack.c.h.s8.bf16 %v137_v28  ;;  %v141_v44 = vld [vmem:[#allocation4 + $0x60] sm:$0xff] }
  0x61   :  { %v2430_v37 = vpack.c.bf16 %v96_v31, %v96_v31  ;;  %v142_v38 = vld [vmem:[#allocation4 + $0x68] sm:$0xff]  ;;  %1025 = vmatprep.mubr.bf16.mxu1 %v2428_v36  ;;  %v501_v41 = vunpack.c.h.s8.bf16 %v169_v29  ;;  %v173_v45 = vld [vmem:[#allocation4 + $0x160] sm:$0xff]  ;;  %v441_v46 = vunpack.c.l.s8.bf16 %v141_v44  ;;  %v445_v52 = vunpack.c.h.s8.bf16 %v141_v44 }
  0x62   :  { %996 = vmatpush1.bf16.msra.mxu1 %v421_v12  ;;  %v174_v39 = vld [vmem:[#allocation4 + $0x168] sm:$0xff]  ;;  %v442_v42 = vunpack.c.l.s8.bf16 %v142_v38  ;;  %v505_v47 = vunpack.c.l.s8.bf16 %v173_v45  ;;  %v446_v48 = vunpack.c.h.s8.bf16 %v142_v38  ;;  %v509_v53 = vunpack.c.h.s8.bf16 %v173_v45  ;;  %v145_v56 = vld [vmem:[#allocation4 + $0x80] sm:$0xff]  ;;  %v131_v45 = vld [vmem:[#allocation4 + $0x10] sm:$0xff] }
  0x63   :  { %1037 = vmatpush1.bf16.msra.mxu0 %v485_v13  ;;  %997 = vmatprep.subr.bf16.mxu1 %v426_v14  ;;  %v506_v43 = vunpack.c.l.s8.bf16 %v174_v39  ;;  %v510_v49 = vunpack.c.h.s8.bf16 %v174_v39  ;;  %v146_v50 = vld [vmem:[#allocation4 + $0x88] sm:$0xff]  ;;  %v177_v57 = vld [vmem:[#allocation4 + $0x180] sm:$0xff]  ;;  %v449_v58 = vunpack.c.l.s8.bf16 %v145_v56  ;;  %v453_v0 = vunpack.c.h.s8.bf16 %v145_v56 }
  0x64   :  { %1038 = vmatprep.subr.bf16.mxu0 %v490_v15  ;;  %1066 = vmatprep.mubr.bf16.mxu0 %v2430_v37  ;;  %v178_v51 = vld [vmem:[#allocation4 + $0x188] sm:$0xff]  ;;  %v450_v54 = vunpack.c.l.s8.bf16 %v146_v50  ;;  %v513_v59 = vunpack.c.l.s8.bf16 %v177_v57  ;;  %v454_v60 = vunpack.c.h.s8.bf16 %v146_v50  ;;  %v517_v1 = vunpack.c.h.s8.bf16 %v177_v57  ;;  %v149_v4 = vld [vmem:[#allocation4 + $0xa0] sm:$0xff] }
  0x65   :  { %v514_v55 = vunpack.c.l.s8.bf16 %v178_v51  ;;  %v518_v61 = vunpack.c.h.s8.bf16 %v178_v51  ;;  %v150_v62 = vld [vmem:[#allocation4 + $0xa8] sm:$0xff]  ;;  %v181_v5 = vld [vmem:[#allocation4 + $0x1a0] sm:$0xff]  ;;  %v457_v6 = vunpack.c.l.s8.bf16 %v149_v4  ;;  %v461_v12 = vunpack.c.h.s8.bf16 %v149_v4 }
  0x66   :  { %998 = vmatpush1.bf16.msra.mxu1 %v425_v18  ;;  %v182_v63 = vld [vmem:[#allocation4 + $0x1a8] sm:$0xff]  ;;  %v458_v2 = vunpack.c.l.s8.bf16 %v150_v62  ;;  %v521_v7 = vunpack.c.l.s8.bf16 %v181_v5  ;;  %v462_v8 = vunpack.c.h.s8.bf16 %v150_v62  ;;  %v525_v13 = vunpack.c.h.s8.bf16 %v181_v5  ;;  %v153_v16 = vld [vmem:[#allocation4 + $0xc0] sm:$0xff] }
  0x67   :  { %1039 = vmatpush1.bf16.msra.mxu0 %v489_v19  ;;  %999 = vmatprep.subr.bf16.mxu1 %v430_v20  ;;  %v522_v3 = vunpack.c.l.s8.bf16 %v182_v63  ;;  %v526_v9 = vunpack.c.h.s8.bf16 %v182_v63  ;;  %v154_v10 = vld [vmem:[#allocation4 + $0xc8] sm:$0xff]  ;;  %v185_v17 = vld [vmem:[#allocation4 + $0x1c0] sm:$0xff]  ;;  %v465_v18 = vunpack.c.l.s8.bf16 %v153_v16  ;;  %v419_v50 = vunpack.c.l.s8.bf16 %v131_v45 }
  0x68   :  { %1040 = vmatprep.subr.bf16.mxu0 %v494_v21  ;;  %v186_v11 = vld [vmem:[#allocation4 + $0x1c8] sm:$0xff]  ;;  %v466_v14 = vunpack.c.l.s8.bf16 %v154_v10  ;;  %v529_v19 = vunpack.c.l.s8.bf16 %v185_v17  ;;  %v470_v20 = vunpack.c.h.s8.bf16 %v154_v10  ;;  %v157_v28 = vld [vmem:[#allocation4 + $0xe0] sm:$0xff]  ;;  %v423_v57 = vunpack.c.h.s8.bf16 %v131_v45 }
  0x69   :  { %v530_v15 = vunpack.c.l.s8.bf16 %v186_v11  ;;  %v534_v21 = vunpack.c.h.s8.bf16 %v186_v11  ;;  %v158_v22 = vld [vmem:[#allocation4 + $0xe8] sm:$0xff]  ;;  %v189_v29 = vld [vmem:[#allocation4 + $0x1e0] sm:$0xff]  ;;  %v473_v30 = vunpack.c.l.s8.bf16 %v157_v28  ;;  %v477_v38 = vunpack.c.h.s8.bf16 %v157_v28 }
  0x6a   :  { %1000 = vmatpush1.bf16.msra.mxu1 %v429_v24  ;;  %v190_v23 = vld [vmem:[#allocation4 + $0x1e8] sm:$0xff]  ;;  %v469_v24 = vunpack.c.h.s8.bf16 %v153_v16  ;;  %v537_v31 = vunpack.c.l.s8.bf16 %v189_v29  ;;  %v541_v39 = vunpack.c.h.s8.bf16 %v189_v29  ;;  %v193_v44 = vld [vmem:[#allocation4 + $0x200] sm:$0xff] }
  0x6b   :  { %1041 = vmatpush1.bf16.msra.mxu0 %v493_v25  ;;  %1001 = vmatprep.subr.bf16.mxu1 %v434_v26  ;;  %v533_v25 = vunpack.c.h.s8.bf16 %v185_v17  ;;  %v474_v26 = vunpack.c.l.s8.bf16 %v158_v22  ;;  %v549_v56 = vunpack.c.h.s8.bf16 %v193_v44  ;;  %v213_v45 = vld [vmem:[#allocation4 + $0x2a0] sm:$0xff] }
  0x6c   :  { %1042 = vmatprep.subr.bf16.mxu0 %v498_v27  ;;  %v538_v27 = vunpack.c.l.s8.bf16 %v190_v23 }
  0x6e   :  { %1002 = vmatpush1.bf16.msra.mxu1 %v433_v32  ;;  %v478_v32 = vunpack.c.h.s8.bf16 %v158_v22 }
  0x6f   :  { %1043 = vmatpush1.bf16.msra.mxu0 %v497_v33  ;;  %1003 = vmatprep.subr.bf16.mxu1 %v438_v34  ;;  %v542_v33 = vunpack.c.h.s8.bf16 %v190_v23  ;;  %v194_v34 = vld [vmem:[#allocation4 + $0x208] sm:$0xff] }
  0x70   :  { %1044 = vmatprep.subr.bf16.mxu0 %v502_v35  ;;  %v132_v35 = vld [vmem:[#allocation4 + $0x18] sm:$0xff]  ;;  %v550_v51 = vunpack.c.h.s8.bf16 %v194_v34 }
  0x72   :  { %1004 = vmatpush1.bf16.msra.mxu1 %v437_v40  ;;  %v93_v40 = vld [vmem:[#allocation2] sm:$0xff] }
  0x73   :  { %1045 = vmatpush1.bf16.msra.mxu0 %v501_v41  ;;  %1005 = vmatprep.subr.bf16.mxu1 %v442_v42  ;;  %v95_v41 = vld [vmem:[#allocation2 + $0x10] sm:$0xff]  ;;  %v546_v42 = vunpack.c.l.s8.bf16 %v194_v34 }
  0x74   :  { %1046 = vmatprep.subr.bf16.mxu0 %v506_v43  ;;  %v420_v43 = vunpack.c.l.s8.bf16 %v132_v35 }
  0x76   :  { %1006 = vmatpush1.bf16.msra.mxu1 %v441_v46  ;;  %v2434_v46 = vpack.c.bf16 %v93_v40, %v93_v40  ;;  %v152_v40 = vld [vmem:[#allocation4 + $0xb8] sm:$0xff] }
  0x77   :  { %1047 = vmatpush1.bf16.msra.mxu0 %v505_v47  ;;  %1007 = vmatprep.subr.bf16.mxu1 %v446_v48  ;;  %v2436_v47 = vpack.c.bf16 %v95_v41, %v95_v41  ;;  %v98_v48 = vld [vmem:[#allocation2 + $0x28] sm:$0xff] }
  0x78   :  { %1048 = vmatprep.subr.bf16.mxu0 %v510_v49  ;;  %v545_v49 = vunpack.c.l.s8.bf16 %v193_v44  ;;  %v460_v44 = vunpack.c.l.s8.bf16 %v152_v40 }
  0x7a   :  { %1008 = vmatpush1.bf16.msra.mxu1 %v445_v52  ;;  %v424_v52 = vunpack.c.h.s8.bf16 %v132_v35 }
  0x7b   :  { %1049 = vmatpush1.bf16.msra.mxu0 %v509_v53  ;;  %1009 = vmatprep.subr.bf16.mxu1 %v450_v54  ;;  %v198_v53 = vld [vmem:[#allocation4 + $0x228] sm:$0xff]  ;;  %v136_v54 = vld [vmem:[#allocation4 + $0x38] sm:$0xff] }
  0x7c   :  { %1050 = vmatprep.subr.bf16.mxu0 %v514_v55  ;;  %v2438_v55 = vpack.c.bf16 %v98_v48, %v98_v48  ;;  %v151_v48 = vld [vmem:[#allocation4 + $0xb0] sm:$0xff] }
  0x7e   :  { %1010 = vmatpush1.bf16.msra.mxu1 %v449_v58  ;;  %v554_v58 = vunpack.c.l.s8.bf16 %v198_v53 }
  0x7f   :  { %1051 = vmatpush1.bf16.msra.mxu0 %v513_v59  ;;  %1011 = vmatprep.subr.bf16.mxu1 %v454_v60  ;;  %v428_v59 = vunpack.c.l.s8.bf16 %v136_v54  ;;  %v197_v60 = vld [vmem:[#allocation4 + $0x220] sm:$0xff] }
  0x80   :  { %1052 = vmatprep.subr.bf16.mxu0 %v518_v61  ;;  %v135_v61 = vld [vmem:[#allocation4 + $0x30] sm:$0xff]  ;;  %v553_v62 = vunpack.c.l.s8.bf16 %v197_v60  ;;  %v557_v4 = vunpack.c.h.s8.bf16 %v197_v60  ;;  %v217_v60 = vld [vmem:[#allocation4 + $0x2c0] sm:$0xff] }
  0x81   :  { %v427_v63 = vunpack.c.l.s8.bf16 %v135_v61  ;;  %v431_v5 = vunpack.c.h.s8.bf16 %v135_v61  ;;  %v155_v61 = vld [vmem:[#allocation4 + $0xd0] sm:$0xff] }
  0x82   :  { %1012 = vmatpush1.bf16.msra.mxu1 %v453_v0  ;;  %v558_v0 = vunpack.c.h.s8.bf16 %v198_v53  ;;  %v218_v53 = vld [vmem:[#allocation4 + $0x2c8] sm:$0xff] }
  0x83   :  { %1053 = vmatpush1.bf16.msra.mxu0 %v517_v1  ;;  %1013 = vmatprep.subr.bf16.mxu1 %v458_v2  ;;  %v432_v1 = vunpack.c.h.s8.bf16 %v136_v54  ;;  %v202_v2 = vld [vmem:[#allocation4 + $0x248] sm:$0xff]  ;;  %v156_v54 = vld [vmem:[#allocation4 + $0xd8] sm:$0xff] }
  0x84   :  { %1054 = vmatprep.subr.bf16.mxu0 %v522_v3  ;;  %v140_v3 = vld [vmem:[#allocation4 + $0x58] sm:$0xff]  ;;  %v566_v11 = vunpack.c.h.s8.bf16 %v202_v2 }
  0x86   :  { %1014 = vmatpush1.bf16.msra.mxu1 %v457_v6  ;;  %v562_v6 = vunpack.c.l.s8.bf16 %v202_v2  ;;  %v222_v2 = vld [vmem:[#allocation4 + $0x2e8] sm:$0xff] }
  0x87   :  { %1055 = vmatpush1.bf16.msra.mxu0 %v521_v7  ;;  %1015 = vmatprep.subr.bf16.mxu1 %v462_v8  ;;  %v436_v7 = vunpack.c.l.s8.bf16 %v140_v3  ;;  %v201_v8 = vld [vmem:[#allocation4 + $0x240] sm:$0xff] }
  0x88   :  { %1056 = vmatprep.subr.bf16.mxu0 %v526_v9  ;;  %v561_v9 = vunpack.c.l.s8.bf16 %v201_v8 }
  0x8a   :  { %1016 = vmatpush1.bf16.msra.mxu1 %v461_v12  ;;  %v440_v12 = vunpack.c.h.s8.bf16 %v140_v3  ;;  %v160_v3 = vld [vmem:[#allocation4 + $0xf8] sm:$0xff] }
  0x8b   :  { %1057 = vmatpush1.bf16.msra.mxu0 %v525_v13  ;;  %1017 = vmatprep.subr.bf16.mxu1 %v466_v14  ;;  %v206_v13 = vld [vmem:[#allocation4 + $0x268] sm:$0xff]  ;;  %v144_v14 = vld [vmem:[#allocation4 + $0x78] sm:$0xff] }
  0x8c   :  { %1058 = vmatprep.subr.bf16.mxu0 %v530_v15  ;;  %v565_v15 = vunpack.c.h.s8.bf16 %v201_v8  ;;  %v570_v17 = vunpack.c.l.s8.bf16 %v206_v13  ;;  %v574_v23 = vunpack.c.h.s8.bf16 %v206_v13  ;;  %v221_v8 = vld [vmem:[#allocation4 + $0x2e0] sm:$0xff]  ;;  %v226_v13 = vld [vmem:[#allocation4 + $0x308] sm:$0xff] }
  0x8e   :  { %1018 = vmatpush1.bf16.msra.mxu1 %v465_v18  ;;  %v444_v18 = vunpack.c.l.s8.bf16 %v144_v14 }
  0x8f   :  { %1059 = vmatpush1.bf16.msra.mxu0 %v529_v19  ;;  %1019 = vmatprep.subr.bf16.mxu1 %v470_v20  ;;  %v205_v19 = vld [vmem:[#allocation4 + $0x260] sm:$0xff]  ;;  %v143_v20 = vld [vmem:[#allocation4 + $0x70] sm:$0xff] }
  0x90   :  { %1060 = vmatprep.subr.bf16.mxu0 %v534_v21  ;;  %v569_v21 = vunpack.c.l.s8.bf16 %v205_v19  ;;  %v443_v22 = vunpack.c.l.s8.bf16 %v143_v20  ;;  %v447_v28 = vunpack.c.h.s8.bf16 %v143_v20  ;;  %v225_v20 = vld [vmem:[#allocation4 + $0x300] sm:$0xff] }
  0x92   :  { %1020 = vmatpush1.bf16.msra.mxu1 %v469_v24  ;;  %v448_v24 = vunpack.c.h.s8.bf16 %v144_v14  ;;  %v164_v14 = vld [vmem:[#allocation4 + $0x118] sm:$0xff] }
  0x93   :  { %1061 = vmatpush1.bf16.msra.mxu0 %v533_v25  ;;  %1021 = vmatprep.subr.bf16.mxu1 %v474_v26  ;;  %v210_v25 = vld [vmem:[#allocation4 + $0x288] sm:$0xff]  ;;  %v148_v26 = vld [vmem:[#allocation4 + $0x98] sm:$0xff] }
  0x94   :  { %1062 = vmatprep.subr.bf16.mxu0 %v538_v27  ;;  %v573_v27 = vunpack.c.h.s8.bf16 %v205_v19  ;;  %v578_v29 = vunpack.c.l.s8.bf16 %v210_v25  ;;  %v582_v35 = vunpack.c.h.s8.bf16 %v210_v25  ;;  %v484_v19 = vunpack.c.l.s8.bf16 %v164_v14 }
  0x96   :  { %1022 = vmatpush1.bf16.msra.mxu1 %v473_v30  ;;  %v452_v30 = vunpack.c.l.s8.bf16 %v148_v26 }
  0x97   :  { %1063 = vmatpush1.bf16.msra.mxu0 %v537_v31  ;;  %1023 = vmatprep.subr.bf16.mxu1 %v478_v32  ;;  %v209_v31 = vld [vmem:[#allocation4 + $0x280] sm:$0xff]  ;;  %v147_v32 = vld [vmem:[#allocation4 + $0x90] sm:$0xff] }
  0x98   :  { %1064 = vmatprep.subr.bf16.mxu0 %v542_v33  ;;  %v577_v33 = vunpack.c.l.s8.bf16 %v209_v31  ;;  %v451_v34 = vunpack.c.l.s8.bf16 %v147_v32  ;;  %v581_v41 = vunpack.c.h.s8.bf16 %v209_v31  ;;  %v613_v31 = vunpack.c.h.s8.bf16 %v225_v20 }
  0x9a   :  { %1024 = vmatpush1.bf16.msra.mxu1 %v477_v38  ;;  %v456_v38 = vunpack.c.h.s8.bf16 %v148_v26  ;;  %v614_v26 = vunpack.c.h.s8.bf16 %v226_v13 }
  0x9b   :  { %1065 = vmatpush1.bf16.msra.mxu0 %v541_v39  ;;  %1362 = vmatprep.subr.bf16.mxu1 %v420_v43  ;;  %v214_v39 = vld [vmem:[#allocation4 + $0x2a8] sm:$0xff] }
  0x9c   :  { %1075 = vmatprep.subr.bf16.mxu0 %v546_v42  ;;  %v455_v42 = vunpack.c.h.s8.bf16 %v147_v32  ;;  %v586_v43 = vunpack.c.l.s8.bf16 %v214_v39 }
  0x9d   :  { %1026 = vmatmul.mubr.bf16.vlgmr.msra.gmra.mrb[0].mxu1 %v2434_v46 }
  0x9e   :  { %1067 = vmatmul.mubr.bf16.vlgmr.msra.gmra.mrb[0].mxu0 %v2436_v47  ;;  %1363 = vmatpush1.bf16.msra.mxu1 %v419_v50  ;;  %v459_v50 = vunpack.c.l.s8.bf16 %v151_v48 }
  0x9f   :  { %1076 = vmatpush1.bf16.msra.mxu0 %v545_v49  ;;  %1364 = vmatprep.subr.bf16.mxu1 %v424_v52  ;;  %v585_v49 = vunpack.c.l.s8.bf16 %v213_v45  ;;  %v464_v52 = vunpack.c.h.s8.bf16 %v152_v40 }
  0xa0   :  { %1077 = vmatprep.subr.bf16.mxu0 %v550_v51  ;;  %1107 = vmatprep.mubr.bf16.mxu0 %v2438_v55  ;;  %v590_v51 = vunpack.c.h.s8.bf16 %v214_v39 }
  0xa1   :  { %1394 = vmatprep.mubr.bf16.mxu1 %v2428_v36  ;;  %v139_v36 = vld [vmem:[#allocation4 + $0x50] sm:$0xff] }
  0xa2   :  { %1365 = vmatpush1.bf16.msra.mxu1 %v423_v57  ;;  %v435_v10 = vunpack.c.l.s8.bf16 %v139_v36  ;;  %v439_v16 = vunpack.c.h.s8.bf16 %v139_v36  ;;  %v463_v57 = vunpack.c.h.s8.bf16 %v151_v48  ;;  %v159_v36 = vld [vmem:[#allocation4 + $0xf0] sm:$0xff] }
  0xa3   :  { %1078 = vmatpush1.bf16.msra.mxu0 %v549_v56  ;;  %1366 = vmatprep.subr.bf16.mxu1 %v428_v59  ;;  %v589_v56 = vunpack.c.h.s8.bf16 %v213_v45  ;;  %v468_v59 = vunpack.c.l.s8.bf16 %v156_v54 }
  0xa4   :  { %1079 = vmatprep.subr.bf16.mxu0 %v554_v58  ;;  %v594_v58 = vunpack.c.l.s8.bf16 %v218_v53 }
  0xa6   :  { %1367 = vmatpush1.bf16.msra.mxu1 %v427_v63  ;;  %v467_v63 = vunpack.c.l.s8.bf16 %v155_v61 }
  0xa7   :  { %1080 = vmatpush1.bf16.msra.mxu0 %v553_v62  ;;  %1368 = vmatprep.subr.bf16.mxu1 %v432_v1  ;;  %v593_v62 = vunpack.c.l.s8.bf16 %v217_v60  ;;  %v472_v1 = vunpack.c.h.s8.bf16 %v156_v54 }
  0xa8   :  { %1081 = vmatprep.subr.bf16.mxu0 %v558_v0  ;;  %v598_v0 = vunpack.c.h.s8.bf16 %v218_v53 }
  0xaa   :  { %1369 = vmatpush1.bf16.msra.mxu1 %v431_v5  ;;  %v471_v5 = vunpack.c.h.s8.bf16 %v155_v61 }
  0xab   :  { %1082 = vmatpush1.bf16.msra.mxu0 %v557_v4  ;;  %1370 = vmatprep.subr.bf16.mxu1 %v436_v7  ;;  %v597_v4 = vunpack.c.h.s8.bf16 %v217_v60  ;;  %v476_v7 = vunpack.c.l.s8.bf16 %v160_v3 }
  0xac   :  { %1083 = vmatprep.subr.bf16.mxu0 %v562_v6  ;;  %v602_v6 = vunpack.c.l.s8.bf16 %v222_v2 }
  0xae   :  { %1371 = vmatpush1.bf16.msra.mxu1 %v435_v10  ;;  %v475_v10 = vunpack.c.l.s8.bf16 %v159_v36 }
  0xaf   :  { %1084 = vmatpush1.bf16.msra.mxu0 %v561_v9  ;;  %1372 = vmatprep.subr.bf16.mxu1 %v440_v12  ;;  %v601_v9 = vunpack.c.l.s8.bf16 %v221_v8  ;;  %v480_v12 = vunpack.c.h.s8.bf16 %v160_v3 }
  0xb0   :  { %1085 = vmatprep.subr.bf16.mxu0 %v566_v11  ;;  %v606_v11 = vunpack.c.h.s8.bf16 %v222_v2 }
  0xb2   :  { %1373 = vmatpush1.bf16.msra.mxu1 %v439_v16  ;;  %v479_v16 = vunpack.c.h.s8.bf16 %v159_v36 }
  0xb3   :  { %1086 = vmatpush1.bf16.msra.mxu0 %v565_v15  ;;  %1374 = vmatprep.subr.bf16.mxu1 %v444_v18  ;;  %v605_v15 = vunpack.c.h.s8.bf16 %v221_v8  ;;  %v610_v18 = vunpack.c.l.s8.bf16 %v226_v13 }
  0xb4   :  { %1087 = vmatprep.subr.bf16.mxu0 %v570_v17  ;;  %v97_v17 = vld [vmem:[#allocation2 + $0x20] sm:$0xff] }
  0xb6   :  { %1375 = vmatpush1.bf16.msra.mxu1 %v443_v22  ;;  %v2444_v22 = vpack.c.bf16 %v97_v17, %v97_v17 }
  0xb7   :  { %1088 = vmatpush1.bf16.msra.mxu0 %v569_v21  ;;  %1376 = vmatprep.subr.bf16.mxu1 %v448_v24  ;;  %v163_v21 = vld [vmem:[#allocation4 + $0x110] sm:$0xff]  ;;  %v609_v24 = vunpack.c.l.s8.bf16 %v225_v20 }
  0xb8   :  { %1089 = vmatprep.subr.bf16.mxu0 %v574_v23  ;;  %v100_v23 = vld [vmem:[#allocation2 + $0x38] sm:$0xff]  ;;  %v483_v25 = vunpack.c.l.s8.bf16 %v163_v21  ;;  %v487_v32 = vunpack.c.h.s8.bf16 %v163_v21  ;;  %v245_v21 = vld [vmem:[#allocation4 + $0x3a0] sm:$0xff] }
  0xba   :  { %1377 = vmatpush1.bf16.msra.mxu1 %v447_v28  ;;  %v230_v28 = vld [vmem:[#allocation4 + $0x328] sm:$0xff] }
  0xbb   :  { %1090 = vmatpush1.bf16.msra.mxu0 %v573_v27  ;;  %1378 = vmatprep.subr.bf16.mxu1 %v452_v30  ;;  %v488_v27 = vunpack.c.h.s8.bf16 %v164_v14  ;;  %v2446_v30 = vpack.c.bf16 %v100_v23, %v100_v23  ;;  %v183_v23 = vld [vmem:[#allocation4 + $0x1b0] sm:$0xff] }
  0xbc   :  { %1091 = vmatprep.subr.bf16.mxu0 %v578_v29  ;;  %v168_v29 = vld [vmem:[#allocation4 + $0x138] sm:$0xff] }
  0xbe   :  { %1379 = vmatpush1.bf16.msra.mxu1 %v451_v34  ;;  %v492_v34 = vunpack.c.l.s8.bf16 %v168_v29 }
  0xbf   :  { %1092 = vmatpush1.bf16.msra.mxu0 %v577_v33  ;;  %1380 = vmatprep.subr.bf16.mxu1 %v456_v38  ;;  %v618_v33 = vunpack.c.l.s8.bf16 %v230_v28  ;;  %v167_v38 = vld [vmem:[#allocation4 + $0x130] sm:$0xff] }
  0xc0   :  { %1093 = vmatprep.subr.bf16.mxu0 %v582_v35  ;;  %v229_v35 = vld [vmem:[#allocation4 + $0x320] sm:$0xff]  ;;  %v491_v40 = vunpack.c.l.s8.bf16 %v167_v38  ;;  %v495_v45 = vunpack.c.h.s8.bf16 %v167_v38  ;;  %v187_v38 = vld [vmem:[#allocation4 + $0x1d0] sm:$0xff] }
  0xc1   :  { %v617_v39 = vunpack.c.l.s8.bf16 %v229_v35 }
  0xc2   :  { %1381 = vmatpush1.bf16.msra.mxu1 %v455_v42  ;;  %v234_v42 = vld [vmem:[#allocation4 + $0x348] sm:$0xff] }
  0xc3   :  { %1094 = vmatpush1.bf16.msra.mxu0 %v581_v41  ;;  %1382 = vmatprep.subr.bf16.mxu1 %v460_v44  ;;  %v496_v41 = vunpack.c.h.s8.bf16 %v168_v29  ;;  %v621_v44 = vunpack.c.h.s8.bf16 %v229_v35  ;;  %v626_v48 = vunpack.c.l.s8.bf16 %v234_v42  ;;  %v630_v53 = vunpack.c.h.s8.bf16 %v234_v42  ;;  %v188_v29 = vld [vmem:[#allocation4 + $0x1d8] sm:$0xff]  ;;  %v249_v35 = vld [vmem:[#allocation4 + $0x3c0] sm:$0xff]  ;;  %v254_v42 = vld [vmem:[#allocation4 + $0x3e8] sm:$0xff] }
  0xc4   :  { %1095 = vmatprep.subr.bf16.mxu0 %v586_v43  ;;  %v172_v43 = vld [vmem:[#allocation4 + $0x158] sm:$0xff] }
  0xc5   :  { %v504_v54 = vunpack.c.h.s8.bf16 %v172_v43 }
  0xc6   :  { %1383 = vmatpush1.bf16.msra.mxu1 %v459_v50  ;;  %v233_v50 = vld [vmem:[#allocation4 + $0x340] sm:$0xff] }
  0xc7   :  { %1096 = vmatpush1.bf16.msra.mxu0 %v585_v49  ;;  %1384 = vmatprep.subr.bf16.mxu1 %v464_v52  ;;  %v500_v49 = vunpack.c.l.s8.bf16 %v172_v43  ;;  %v192_v43 = vld [vmem:[#allocation4 + $0x1f8] sm:$0xff] }
  0xc8   :  { %1097 = vmatprep.subr.bf16.mxu0 %v590_v51  ;;  %v625_v51 = vunpack.c.l.s8.bf16 %v233_v50 }
  0xca   :  { %1385 = vmatpush1.bf16.msra.mxu1 %v463_v57  ;;  %v176_v57 = vld [vmem:[#allocation4 + $0x178] sm:$0xff] }
  0xcb   :  { %1098 = vmatpush1.bf16.msra.mxu0 %v589_v56  ;;  %1386 = vmatprep.subr.bf16.mxu1 %v468_v59  ;;  %v238_v56 = vld [vmem:[#allocation4 + $0x368] sm:$0xff]  ;;  %v508_v61 = vunpack.c.l.s8.bf16 %v176_v57  ;;  %v512_v3 = vunpack.c.h.s8.bf16 %v176_v57  ;;  %v196_v57 = vld [vmem:[#allocation4 + $0x218] sm:$0xff] }
  0xcc   :  { %1099 = vmatprep.subr.bf16.mxu0 %v594_v58  ;;  %v629_v58 = vunpack.c.h.s8.bf16 %v233_v50  ;;  %v634_v60 = vunpack.c.l.s8.bf16 %v238_v56  ;;  %v638_v2 = vunpack.c.h.s8.bf16 %v238_v56  ;;  %v253_v50 = vld [vmem:[#allocation4 + $0x3e0] sm:$0xff]  ;;  %v258_v56 = vld [vmem:[#allocation4 + $0x408] sm:$0xff] }
  0xce   :  { %1387 = vmatpush1.bf16.msra.mxu1 %v467_v63  ;;  %v175_v63 = vld [vmem:[#allocation4 + $0x170] sm:$0xff] }
  0xcf   :  { %1100 = vmatpush1.bf16.msra.mxu0 %v593_v62  ;;  %1388 = vmatprep.subr.bf16.mxu1 %v472_v1  ;;  %v237_v62 = vld [vmem:[#allocation4 + $0x360] sm:$0xff]  ;;  %v507_v1 = vunpack.c.l.s8.bf16 %v175_v63 }
  0xd0   :  { %1101 = vmatprep.subr.bf16.mxu0 %v598_v0  ;;  %v633_v0 = vunpack.c.l.s8.bf16 %v237_v62 }
  0xd2   :  { %1389 = vmatpush1.bf16.msra.mxu1 %v471_v5  ;;  %v180_v5 = vld [vmem:[#allocation4 + $0x198] sm:$0xff] }
  0xd3   :  { %1102 = vmatpush1.bf16.msra.mxu0 %v597_v4  ;;  %1390 = vmatprep.subr.bf16.mxu1 %v476_v7  ;;  %v242_v4 = vld [vmem:[#allocation4 + $0x388] sm:$0xff]  ;;  %v511_v7 = vunpack.c.h.s8.bf16 %v175_v63  ;;  %v516_v36 = vunpack.c.l.s8.bf16 %v180_v5  ;;  %v520_v14 = vunpack.c.h.s8.bf16 %v180_v5  ;;  %v257_v63 = vld [vmem:[#allocation4 + $0x400] sm:$0xff]  ;;  %v678_v5 = vunpack.c.h.s8.bf16 %v258_v56 }
  0xd4   :  { %1103 = vmatprep.subr.bf16.mxu0 %v602_v6  ;;  %v637_v6 = vunpack.c.h.s8.bf16 %v237_v62  ;;  %v642_v8 = vunpack.c.l.s8.bf16 %v242_v4  ;;  %v646_v13 = vunpack.c.h.s8.bf16 %v242_v4  ;;  %v548_v62 = vunpack.c.l.s8.bf16 %v196_v57 }
  0xd6   :  { %1391 = vmatpush1.bf16.msra.mxu1 %v475_v10  ;;  %v179_v10 = vld [vmem:[#allocation4 + $0x190] sm:$0xff] }
  0xd7   :  { %1104 = vmatpush1.bf16.msra.mxu0 %v601_v9  ;;  %1392 = vmatprep.subr.bf16.mxu1 %v480_v12  ;;  %v241_v9 = vld [vmem:[#allocation4 + $0x380] sm:$0xff]  ;;  %v515_v12 = vunpack.c.l.s8.bf16 %v179_v10 }
  0xd8   :  { %1105 = vmatprep.subr.bf16.mxu0 %v606_v11  ;;  %v641_v11 = vunpack.c.l.s8.bf16 %v241_v9  ;;  %v645_v17 = vunpack.c.h.s8.bf16 %v241_v9  ;;  %v677_v9 = vunpack.c.h.s8.bf16 %v257_v63 }
  0xda   :  { %1393 = vmatpush1.bf16.msra.mxu1 %v479_v16  ;;  %v184_v16 = vld [vmem:[#allocation4 + $0x1b8] sm:$0xff] }
  0xdb   :  { %1106 = vmatpush1.bf16.msra.mxu0 %v605_v15  ;;  %1403 = vmatprep.subr.bf16.mxu1 %v484_v19  ;;  %v246_v15 = vld [vmem:[#allocation4 + $0x3a8] sm:$0xff]  ;;  %v524_v20 = vunpack.c.l.s8.bf16 %v184_v16 }
  0xdc   :  { %1116 = vmatprep.subr.bf16.mxu0 %v610_v18  ;;  %v519_v18 = vunpack.c.h.s8.bf16 %v179_v10  ;;  %v650_v19 = vunpack.c.l.s8.bf16 %v246_v15 }
  0xdd   :  { %1395 = vmatmul.mubr.bf16.vlgmr.msra.gmra.mrb[4].mxu1 %v2434_v46  ;;  %v622_v46 = vunpack.c.h.s8.bf16 %v230_v28  ;;  %v250_v28 = vld [vmem:[#allocation4 + $0x3c8] sm:$0xff] }
  0xde   :  { %1108 = vmatmul.mubr.bf16.vlgmr.msra.gmra.mrb[0].mxu0 %v2444_v22  ;;  %1404 = vmatpush1.bf16.msra.mxu1 %v483_v25  ;;  %v523_v25 = vunpack.c.l.s8.bf16 %v183_v23 }
  0xdf   :  { %1117 = vmatpush1.bf16.msra.mxu0 %v609_v24  ;;  %1405 = vmatprep.subr.bf16.mxu1 %v488_v27  ;;  %v649_v24 = vunpack.c.l.s8.bf16 %v245_v21  ;;  %v528_v27 = vunpack.c.h.s8.bf16 %v184_v16 }
  0xe0   :  { %1118 = vmatprep.subr.bf16.mxu0 %v614_v26  ;;  %1148 = vmatprep.mubr.bf16.mxu0 %v2446_v30  ;;  %v654_v26 = vunpack.c.h.s8.bf16 %v246_v15 }
  0xe1   :  { %1435 = vmatprep.mubr.bf16.mxu1 %v2430_v37  ;;  %v171_v37 = vld [vmem:[#allocation4 + $0x150] sm:$0xff] }
  0xe2   :  { %1406 = vmatpush1.bf16.msra.mxu1 %v487_v32  ;;  %v499_v52 = vunpack.c.l.s8.bf16 %v171_v37  ;;  %v503_v59 = vunpack.c.h.s8.bf16 %v171_v37  ;;  %v527_v32 = vunpack.c.h.s8.bf16 %v183_v23  ;;  %v191_v37 = vld [vmem:[#allocation4 + $0x1f0] sm:$0xff] }
  0xe3   :  { %1119 = vmatpush1.bf16.msra.mxu0 %v613_v31  ;;  %1407 = vmatprep.subr.bf16.mxu1 %v492_v34  ;;  %v653_v31 = vunpack.c.h.s8.bf16 %v245_v21  ;;  %v532_v34 = vunpack.c.l.s8.bf16 %v188_v29 }
  0xe4   :  { %1120 = vmatprep.subr.bf16.mxu0 %v618_v33  ;;  %v658_v33 = vunpack.c.l.s8.bf16 %v250_v28 }
  0xe6   :  { %1408 = vmatpush1.bf16.msra.mxu1 %v491_v40  ;;  %v531_v40 = vunpack.c.l.s8.bf16 %v187_v38 }
  0xe7   :  { %1121 = vmatpush1.bf16.msra.mxu0 %v617_v39  ;;  %1409 = vmatprep.subr.bf16.mxu1 %v496_v41  ;;  %v657_v39 = vunpack.c.l.s8.bf16 %v249_v35  ;;  %v536_v41 = vunpack.c.h.s8.bf16 %v188_v29 }
  0xe8   :  { %1122 = vmatprep.subr.bf16.mxu0 %v622_v46  ;;  %v662_v46 = vunpack.c.h.s8.bf16 %v250_v28 }
  0xea   :  { %1410 = vmatpush1.bf16.msra.mxu1 %v495_v45  ;;  %v535_v45 = vunpack.c.h.s8.bf16 %v187_v38 }
  0xeb   :  { %1123 = vmatpush1.bf16.msra.mxu0 %v621_v44  ;;  %1411 = vmatprep.subr.bf16.mxu1 %v500_v49  ;;  %v661_v44 = vunpack.c.h.s8.bf16 %v249_v35  ;;  %v540_v49 = vunpack.c.l.s8.bf16 %v192_v43 }
  0xec   :  { %1124 = vmatprep.subr.bf16.mxu0 %v626_v48  ;;  %v666_v48 = vunpack.c.l.s8.bf16 %v254_v42 }
  0xee   :  { %1412 = vmatpush1.bf16.msra.mxu1 %v499_v52  ;;  %v539_v52 = vunpack.c.l.s8.bf16 %v191_v37 }
  0xef   :  { %1125 = vmatpush1.bf16.msra.mxu0 %v625_v51  ;;  %1413 = vmatprep.subr.bf16.mxu1 %v504_v54  ;;  %v665_v51 = vunpack.c.l.s8.bf16 %v253_v50  ;;  %v544_v54 = vunpack.c.h.s8.bf16 %v192_v43 }
  0xf0   :  { %1126 = vmatprep.subr.bf16.mxu0 %v630_v53  ;;  %v670_v53 = vunpack.c.h.s8.bf16 %v254_v42 }
  0xf2   :  { %1414 = vmatpush1.bf16.msra.mxu1 %v503_v59  ;;  %v543_v59 = vunpack.c.h.s8.bf16 %v191_v37 }
  0xf3   :  { %1127 = vmatpush1.bf16.msra.mxu0 %v629_v58  ;;  %1415 = vmatprep.subr.bf16.mxu1 %v508_v61  ;;  %v669_v58 = vunpack.c.h.s8.bf16 %v253_v50  ;;  %v674_v61 = vunpack.c.l.s8.bf16 %v258_v56 }
  0xf4   :  { %1128 = vmatprep.subr.bf16.mxu0 %v634_v60  ;;  %v99_v60 = vld [vmem:[#allocation2 + $0x30] sm:$0xff] }
  0xf6   :  { %1416 = vmatpush1.bf16.msra.mxu1 %v507_v1  ;;  %v2452_v1 = vpack.c.bf16 %v99_v60, %v99_v60 }
  0xf7   :  { %1129 = vmatpush1.bf16.msra.mxu0 %v633_v0  ;;  %1417 = vmatprep.subr.bf16.mxu1 %v512_v3  ;;  %v195_v0 = vld [vmem:[#allocation4 + $0x210] sm:$0xff]  ;;  %v673_v3 = vunpack.c.l.s8.bf16 %v257_v63 }
  0xf8   :  { %1130 = vmatprep.subr.bf16.mxu0 %v638_v2  ;;  %v102_v2 = vld [vmem:[#allocation2 + $0x48] sm:$0xff]  ;;  %v547_v4 = vunpack.c.l.s8.bf16 %v195_v0  ;;  %v551_v10 = vunpack.c.h.s8.bf16 %v195_v0  ;;  %v277_v0 = vld [vmem:[#allocation4 + $0x4a0] sm:$0xff] }
  0xfa   :  { %1418 = vmatpush1.bf16.msra.mxu1 %v511_v7  ;;  %v262_v7 = vld [vmem:[#allocation4 + $0x428] sm:$0xff] }
  0xfb   :  { %1131 = vmatpush1.bf16.msra.mxu0 %v637_v6  ;;  %1419 = vmatprep.subr.bf16.mxu1 %v516_v36  ;;  %v552_v6 = vunpack.c.h.s8.bf16 %v196_v57  ;;  %v2454_v36 = vpack.c.bf16 %v102_v2, %v102_v2  ;;  %v215_v2 = vld [vmem:[#allocation4 + $0x2b0] sm:$0xff] }
  0xfc   :  { %1132 = vmatprep.subr.bf16.mxu0 %v642_v8  ;;  %v200_v8 = vld [vmem:[#allocation4 + $0x238] sm:$0xff] }
  0xfe   :  { %1420 = vmatpush1.bf16.msra.mxu1 %v515_v12  ;;  %v556_v12 = vunpack.c.l.s8.bf16 %v200_v8 }
  0xff   :  { %1133 = vmatpush1.bf16.msra.mxu0 %v641_v11  ;;  %1421 = vmatprep.subr.bf16.mxu1 %v520_v14  ;;  %v682_v11 = vunpack.c.l.s8.bf16 %v262_v7  ;;  %v199_v14 = vld [vmem:[#allocation4 + $0x230] sm:$0xff] }
 0x100   :  { %1134 = vmatprep.subr.bf16.mxu0 %v646_v13  ;;  %v261_v13 = vld [vmem:[#allocation4 + $0x420] sm:$0xff]  ;;  %v555_v16 = vunpack.c.l.s8.bf16 %v199_v14  ;;  %v559_v21 = vunpack.c.h.s8.bf16 %v199_v14  ;;  %v219_v14 = vld [vmem:[#allocation4 + $0x2d0] sm:$0xff] }
 0x101   :  { %v681_v15 = vunpack.c.l.s8.bf16 %v261_v13 }
 0x102   :  { %1422 = vmatpush1.bf16.msra.mxu1 %v519_v18  ;;  %v266_v18 = vld [vmem:[#allocation4 + $0x448] sm:$0xff] }
 0x103   :  { %1135 = vmatpush1.bf16.msra.mxu0 %v645_v17  ;;  %1423 = vmatprep.subr.bf16.mxu1 %v524_v20  ;;  %v560_v17 = vunpack.c.h.s8.bf16 %v200_v8  ;;  %v685_v20 = vunpack.c.h.s8.bf16 %v261_v13  ;;  %v690_v23 = vunpack.c.l.s8.bf16 %v266_v18  ;;  %v694_v28 = vunpack.c.h.s8.bf16 %v266_v18  ;;  %v220_v8 = vld [vmem:[#allocation4 + $0x2d8] sm:$0xff]  ;;  %v281_v13 = vld [vmem:[#allocation4 + $0x4c0] sm:$0xff]  ;;  %v286_v18 = vld [vmem:[#allocation4 + $0x4e8] sm:$0xff] }
 0x104   :  { %1136 = vmatprep.subr.bf16.mxu0 %v650_v19  ;;  %v204_v19 = vld [vmem:[#allocation4 + $0x258] sm:$0xff] }
 0x105   :  { %v568_v29 = vunpack.c.h.s8.bf16 %v204_v19 }
 0x106   :  { %1424 = vmatpush1.bf16.msra.mxu1 %v523_v25  ;;  %v265_v25 = vld [vmem:[#allocation4 + $0x440] sm:$0xff] }
 0x107   :  { %1137 = vmatpush1.bf16.msra.mxu0 %v649_v24  ;;  %1425 = vmatprep.subr.bf16.mxu1 %v528_v27  ;;  %v564_v24 = vunpack.c.l.s8.bf16 %v204_v19  ;;  %v224_v19 = vld [vmem:[#allocation4 + $0x2f8] sm:$0xff] }
 0x108   :  { %1138 = vmatprep.subr.bf16.mxu0 %v654_v26  ;;  %v689_v26 = vunpack.c.l.s8.bf16 %v265_v25 }
 0x10a   :  { %1426 = vmatpush1.bf16.msra.mxu1 %v527_v32  ;;  %v208_v32 = vld [vmem:[#allocation4 + $0x278] sm:$0xff] }
 0x10b   :  { %1139 = vmatpush1.bf16.msra.mxu0 %v653_v31  ;;  %1427 = vmatprep.subr.bf16.mxu1 %v532_v34  ;;  %v270_v31 = vld [vmem:[#allocation4 + $0x468] sm:$0xff]  ;;  %v572_v38 = vunpack.c.l.s8.bf16 %v208_v32  ;;  %v576_v43 = vunpack.c.h.s8.bf16 %v208_v32  ;;  %v228_v32 = vld [vmem:[#allocation4 + $0x318] sm:$0xff] }
 0x10c   :  { %1140 = vmatprep.subr.bf16.mxu0 %v658_v33  ;;  %v693_v33 = vunpack.c.h.s8.bf16 %v265_v25  ;;  %v698_v35 = vunpack.c.l.s8.bf16 %v270_v31  ;;  %v702_v42 = vunpack.c.h.s8.bf16 %v270_v31  ;;  %v285_v25 = vld [vmem:[#allocation4 + $0x4e0] sm:$0xff]  ;;  %v290_v31 = vld [vmem:[#allocation4 + $0x508] sm:$0xff] }
 0x10e   :  { %1428 = vmatpush1.bf16.msra.mxu1 %v531_v40  ;;  %v207_v40 = vld [vmem:[#allocation4 + $0x270] sm:$0xff] }
 0x10f   :  { %1141 = vmatpush1.bf16.msra.mxu0 %v657_v39  ;;  %1429 = vmatprep.subr.bf16.mxu1 %v536_v41  ;;  %v269_v39 = vld [vmem:[#allocation4 + $0x460] sm:$0xff]  ;;  %v571_v41 = vunpack.c.l.s8.bf16 %v207_v40 }
 0x110   :  { %1142 = vmatprep.subr.bf16.mxu0 %v662_v46  ;;  %v697_v46 = vunpack.c.l.s8.bf16 %v269_v39 }
 0x112   :  { %1430 = vmatpush1.bf16.msra.mxu1 %v535_v45  ;;  %v212_v45 = vld [vmem:[#allocation4 + $0x298] sm:$0xff] }
 0x113   :  { %1143 = vmatpush1.bf16.msra.mxu0 %v661_v44  ;;  %1431 = vmatprep.subr.bf16.mxu1 %v540_v49  ;;  %v274_v44 = vld [vmem:[#allocation4 + $0x488] sm:$0xff]  ;;  %v575_v49 = vunpack.c.h.s8.bf16 %v207_v40  ;;  %v580_v37 = vunpack.c.l.s8.bf16 %v212_v45  ;;  %v584_v57 = vunpack.c.h.s8.bf16 %v212_v45  ;;  %v289_v40 = vld [vmem:[#allocation4 + $0x500] sm:$0xff]  ;;  %v742_v45 = vunpack.c.h.s8.bf16 %v290_v31 }
 0x114   :  { %1144 = vmatprep.subr.bf16.mxu0 %v666_v48  ;;  %v701_v48 = vunpack.c.h.s8.bf16 %v269_v39  ;;  %v706_v50 = vunpack.c.l.s8.bf16 %v274_v44  ;;  %v710_v56 = vunpack.c.h.s8.bf16 %v274_v44  ;;  %v612_v39 = vunpack.c.l.s8.bf16 %v228_v32 }
 0x116   :  { %1432 = vmatpush1.bf16.msra.mxu1 %v539_v52  ;;  %v211_v52 = vld [vmem:[#allocation4 + $0x290] sm:$0xff] }
 0x117   :  { %1145 = vmatpush1.bf16.msra.mxu0 %v665_v51  ;;  %1433 = vmatprep.subr.bf16.mxu1 %v544_v54  ;;  %v273_v51 = vld [vmem:[#allocation4 + $0x480] sm:$0xff]  ;;  %v579_v54 = vunpack.c.l.s8.bf16 %v211_v52 }
 0x118   :  { %1146 = vmatprep.subr.bf16.mxu0 %v670_v53  ;;  %v705_v53 = vunpack.c.l.s8.bf16 %v273_v51  ;;  %v709_v60 = vunpack.c.h.s8.bf16 %v273_v51  ;;  %v741_v51 = vunpack.c.h.s8.bf16 %v289_v40 }
 0x11a   :  { %1434 = vmatpush1.bf16.msra.mxu1 %v543_v59  ;;  %v216_v59 = vld [vmem:[#allocation4 + $0x2b8] sm:$0xff] }
 0x11b   :  { %1147 = vmatpush1.bf16.msra.mxu0 %v669_v58  ;;  %1444 = vmatprep.subr.bf16.mxu1 %v548_v62  ;;  %v278_v58 = vld [vmem:[#allocation4 + $0x4a8] sm:$0xff]  ;;  %v588_v63 = vunpack.c.l.s8.bf16 %v216_v59 }
 0x11c   :  { %1157 = vmatprep.subr.bf16.mxu0 %v674_v61  ;;  %v583_v61 = vunpack.c.h.s8.bf16 %v211_v52  ;;  %v714_v62 = vunpack.c.l.s8.bf16 %v278_v58 }
 0x11d   :  { %1436 = vmatmul.mubr.bf16.vlgmr.msra.gmra.mrb[4].mxu1 %v2436_v47  ;;  %v686_v47 = vunpack.c.h.s8.bf16 %v262_v7  ;;  %v282_v7 = vld [vmem:[#allocation4 + $0x4c8] sm:$0xff] }
 0x11e   :  { %1149 = vmatmul.mubr.bf16.vlgmr.msra.gmra.mrb[0].mxu0 %v2452_v1  ;;  %1445 = vmatpush1.bf16.msra.mxu1 %v547_v4  ;;  %v587_v4 = vunpack.c.l.s8.bf16 %v215_v2 }
 0x11f   :  { %1158 = vmatpush1.bf16.msra.mxu0 %v673_v3  ;;  %1446 = vmatprep.subr.bf16.mxu1 %v552_v6  ;;  %v713_v3 = vunpack.c.l.s8.bf16 %v277_v0  ;;  %v592_v6 = vunpack.c.h.s8.bf16 %v216_v59 }
 0x120   :  { %1159 = vmatprep.subr.bf16.mxu0 %v678_v5  ;;  %1189 = vmatprep.mubr.bf16.mxu0 %v2454_v36  ;;  %v718_v5 = vunpack.c.h.s8.bf16 %v278_v58 }
 0x121   :  { %1476 = vmatprep.mubr.bf16.mxu1 %v2438_v55  ;;  %v203_v55 = vld [vmem:[#allocation4 + $0x250] sm:$0xff] }
 0x122   :  { %1447 = vmatpush1.bf16.msra.mxu1 %v551_v10  ;;  %v563_v27 = vunpack.c.l.s8.bf16 %v203_v55  ;;  %v567_v34 = vunpack.c.h.s8.bf16 %v203_v55  ;;  %v591_v10 = vunpack.c.h.s8.bf16 %v215_v2  ;;  %v223_v55 = vld [vmem:[#allocation4 + $0x2f0] sm:$0xff] }
 0x123   :  { %1160 = vmatpush1.bf16.msra.mxu0 %v677_v9  ;;  %1448 = vmatprep.subr.bf16.mxu1 %v556_v12  ;;  %v717_v9 = vunpack.c.h.s8.bf16 %v277_v0  ;;  %v596_v12 = vunpack.c.l.s8.bf16 %v220_v8 }
 0x124   :  { %1161 = vmatprep.subr.bf16.mxu0 %v682_v11  ;;  %v722_v11 = vunpack.c.l.s8.bf16 %v282_v7 }
 0x126   :  { %1449 = vmatpush1.bf16.msra.mxu1 %v555_v16  ;;  %v595_v16 = vunpack.c.l.s8.bf16 %v219_v14 }
 0x127   :  { %1162 = vmatpush1.bf16.msra.mxu0 %v681_v15  ;;  %1450 = vmatprep.subr.bf16.mxu1 %v560_v17  ;;  %v721_v15 = vunpack.c.l.s8.bf16 %v281_v13  ;;  %v600_v17 = vunpack.c.h.s8.bf16 %v220_v8 }
 0x128   :  { %1163 = vmatprep.subr.bf16.mxu0 %v686_v47  ;;  %v726_v47 = vunpack.c.h.s8.bf16 %v282_v7 }
 0x12a   :  { %1451 = vmatpush1.bf16.msra.mxu1 %v559_v21  ;;  %v599_v21 = vunpack.c.h.s8.bf16 %v219_v14 }
 0x12b   :  { %1164 = vmatpush1.bf16.msra.mxu0 %v685_v20  ;;  %1452 = vmatprep.subr.bf16.mxu1 %v564_v24  ;;  %v725_v20 = vunpack.c.h.s8.bf16 %v281_v13  ;;  %v604_v24 = vunpack.c.l.s8.bf16 %v224_v19 }
 0x12c   :  { %1165 = vmatprep.subr.bf16.mxu0 %v690_v23  ;;  %v730_v23 = vunpack.c.l.s8.bf16 %v286_v18 }
 0x12e   :  { %1453 = vmatpush1.bf16.msra.mxu1 %v563_v27  ;;  %v603_v27 = vunpack.c.l.s8.bf16 %v223_v55 }
 0x12f   :  { %1166 = vmatpush1.bf16.msra.mxu0 %v689_v26  ;;  %1454 = vmatprep.subr.bf16.mxu1 %v568_v29  ;;  %v729_v26 = vunpack.c.l.s8.bf16 %v285_v25  ;;  %v608_v29 = vunpack.c.h.s8.bf16 %v224_v19 }
 0x130   :  { %1167 = vmatprep.subr.bf16.mxu0 %v694_v28  ;;  %v734_v28 = vunpack.c.h.s8.bf16 %v286_v18 }
 0x132   :  { %1455 = vmatpush1.bf16.msra.mxu1 %v567_v34  ;;  %v607_v34 = vunpack.c.h.s8.bf16 %v223_v55  ;;  %v244_v55 = vld [vmem:[#allocation4 + $0x398] sm:$0xff] }
 0x133   :  { %1168 = vmatpush1.bf16.msra.mxu0 %v693_v33  ;;  %1456 = vmatprep.subr.bf16.mxu1 %v572_v38  ;;  %v733_v33 = vunpack.c.h.s8.bf16 %v285_v25  ;;  %v738_v38 = vunpack.c.l.s8.bf16 %v290_v31  ;;  %v306_v25 = vld [vmem:[#allocation4 + $0x588] sm:$0xff]  ;;  %v305_v31 = vld [vmem:[#allocation4 + $0x580] sm:$0xff] }
 0x134   :  { %1169 = vmatprep.subr.bf16.mxu0 %v698_v35  ;;  %v101_v35 = vld [vmem:[#allocation2 + $0x40] sm:$0xff] }
 0x136   :  { %1457 = vmatpush1.bf16.msra.mxu1 %v571_v41  ;;  %v2460_v41 = vpack.c.bf16 %v101_v35, %v101_v35  ;;  %v774_v35 = vunpack.c.h.s8.bf16 %v306_v25 }
 0x137   :  { %1170 = vmatpush1.bf16.msra.mxu0 %v697_v46  ;;  %1458 = vmatprep.subr.bf16.mxu1 %v576_v43  ;;  %v227_v46 = vld [vmem:[#allocation4 + $0x310] sm:$0xff]  ;;  %v737_v43 = vunpack.c.l.s8.bf16 %v289_v40  ;;  %v248_v40 = vld [vmem:[#allocation4 + $0x3b8] sm:$0xff] }
 0x138   :  { %1171 = vmatprep.subr.bf16.mxu0 %v702_v42  ;;  %v104_v42 = vld [vmem:[#allocation2 + $0x58] sm:$0xff]  ;;  %v611_v44 = vunpack.c.l.s8.bf16 %v227_v46  ;;  %v615_v52 = vunpack.c.h.s8.bf16 %v227_v46  ;;  %v773_v46 = vunpack.c.h.s8.bf16 %v305_v31 }
 0x13a   :  { %1459 = vmatpush1.bf16.msra.mxu1 %v575_v49  ;;  %v294_v49 = vld [vmem:[#allocation4 + $0x528] sm:$0xff] }
 0x13b   :  { %1172 = vmatpush1.bf16.msra.mxu0 %v701_v48  ;;  %1460 = vmatprep.subr.bf16.mxu1 %v580_v37  ;;  %v616_v48 = vunpack.c.h.s8.bf16 %v228_v32  ;;  %v2462_v37 = vpack.c.bf16 %v104_v42, %v104_v42  ;;  %v243_v32 = vld [vmem:[#allocation4 + $0x390] sm:$0xff] }
 0x13c   :  { %1173 = vmatprep.subr.bf16.mxu0 %v706_v50  ;;  %v232_v50 = vld [vmem:[#allocation4 + $0x338] sm:$0xff]  ;;  %v647_v42 = vunpack.c.h.s8.bf16 %v243_v32 }
 0x13e   :  { %1461 = vmatpush1.bf16.msra.mxu1 %v579_v54  ;;  %v620_v54 = vunpack.c.l.s8.bf16 %v232_v50 }
 0x13f   :  { %1174 = vmatpush1.bf16.msra.mxu0 %v705_v53  ;;  %1462 = vmatprep.subr.bf16.mxu1 %v584_v57  ;;  %v746_v53 = vunpack.c.l.s8.bf16 %v294_v49  ;;  %v231_v57 = vld [vmem:[#allocation4 + $0x330] sm:$0xff] }
 0x140   :  { %1175 = vmatprep.subr.bf16.mxu0 %v710_v56  ;;  %v293_v56 = vld [vmem:[#allocation4 + $0x520] sm:$0xff]  ;;  %v619_v59 = vunpack.c.l.s8.bf16 %v231_v57  ;;  %v623_v0 = vunpack.c.h.s8.bf16 %v231_v57 }
 0x141   :  { %v745_v58 = vunpack.c.l.s8.bf16 %v293_v56 }
 0x142   :  { %1463 = vmatpush1.bf16.msra.mxu1 %v583_v61  ;;  %v298_v61 = vld [vmem:[#allocation4 + $0x548] sm:$0xff] }
 0x143   :  { %1176 = vmatpush1.bf16.msra.mxu0 %v709_v60  ;;  %1464 = vmatprep.subr.bf16.mxu1 %v588_v63  ;;  %v624_v60 = vunpack.c.h.s8.bf16 %v232_v50  ;;  %v749_v63 = vunpack.c.h.s8.bf16 %v293_v56  ;;  %v754_v2 = vunpack.c.l.s8.bf16 %v298_v61  ;;  %v758_v7 = vunpack.c.h.s8.bf16 %v298_v61 }
 0x144   :  { %1177 = vmatprep.subr.bf16.mxu0 %v714_v62  ;;  %v236_v62 = vld [vmem:[#allocation4 + $0x358] sm:$0xff] }
 0x145   :  { %v632_v8 = vunpack.c.h.s8.bf16 %v236_v62 }
 0x146   :  { %1465 = vmatpush1.bf16.msra.mxu1 %v587_v4  ;;  %v297_v4 = vld [vmem:[#allocation4 + $0x540] sm:$0xff] }
 0x147   :  { %1178 = vmatpush1.bf16.msra.mxu0 %v713_v3  ;;  %1466 = vmatprep.subr.bf16.mxu1 %v592_v6  ;;  %v628_v3 = vunpack.c.l.s8.bf16 %v236_v62 }
 0x148   :  { %1179 = vmatprep.subr.bf16.mxu0 %v718_v5  ;;  %v753_v5 = vunpack.c.l.s8.bf16 %v297_v4 }
 0x14a   :  { %1467 = vmatpush1.bf16.msra.mxu1 %v591_v10  ;;  %v240_v10 = vld [vmem:[#allocation4 + $0x378] sm:$0xff] }
 0x14b   :  { %1180 = vmatpush1.bf16.msra.mxu0 %v717_v9  ;;  %1468 = vmatprep.subr.bf16.mxu1 %v596_v12  ;;  %v302_v9 = vld [vmem:[#allocation4 + $0x568] sm:$0xff]  ;;  %v636_v14 = vunpack.c.l.s8.bf16 %v240_v10 }
 0x14c   :  { %1181 = vmatprep.subr.bf16.mxu0 %v722_v11  ;;  %v757_v11 = vunpack.c.h.s8.bf16 %v297_v4  ;;  %v762_v13 = vunpack.c.l.s8.bf16 %v302_v9 }
 0x14e   :  { %1469 = vmatpush1.bf16.msra.mxu1 %v595_v16  ;;  %v239_v16 = vld [vmem:[#allocation4 + $0x370] sm:$0xff] }
 0x14f   :  { %1182 = vmatpush1.bf16.msra.mxu0 %v721_v15  ;;  %1470 = vmatprep.subr.bf16.mxu1 %v600_v17  ;;  %v301_v15 = vld [vmem:[#allocation4 + $0x560] sm:$0xff] }
 0x150   :  { %1183 = vmatprep.subr.bf16.mxu0 %v726_v47  ;;  %v761_v19 = vunpack.c.l.s8.bf16 %v301_v15 }
 0x152   :  { %1471 = vmatpush1.bf16.msra.mxu1 %v599_v21 }
 0x153   :  { %1184 = vmatpush1.bf16.msra.mxu0 %v725_v20  ;;  %1472 = vmatprep.subr.bf16.mxu1 %v604_v24  ;;  %v635_v20 = vunpack.c.l.s8.bf16 %v239_v16  ;;  %v640_v24 = vunpack.c.h.s8.bf16 %v240_v10 }
 0x154   :  { %1185 = vmatprep.subr.bf16.mxu0 %v730_v23  ;;  %v766_v23 = vunpack.c.h.s8.bf16 %v302_v9 }
 0x156   :  { %1473 = vmatpush1.bf16.msra.mxu1 %v603_v27  ;;  %v639_v27 = vunpack.c.h.s8.bf16 %v239_v16 }
 0x157   :  { %1186 = vmatpush1.bf16.msra.mxu0 %v729_v26  ;;  %1474 = vmatprep.subr.bf16.mxu1 %v608_v29  ;;  %v765_v26 = vunpack.c.h.s8.bf16 %v301_v15  ;;  %v644_v29 = vunpack.c.l.s8.bf16 %v244_v55 }
 0x158   :  { %1187 = vmatprep.subr.bf16.mxu0 %v734_v28  ;;  %v770_v28 = vunpack.c.l.s8.bf16 %v306_v25  ;;  %v106_v25 = vld [vmem:[#allocation2 + $0x68] sm:$0xff] }
 0x15a   :  { %1475 = vmatpush1.bf16.msra.mxu1 %v607_v34  ;;  %v643_v34 = vunpack.c.l.s8.bf16 %v243_v32  ;;  %v2474_v32 = vpack.c.bf16 %v106_v25, %v106_v25 }
 0x15b   :  { %1188 = vmatpush1.bf16.msra.mxu0 %v733_v33  ;;  %1485 = vmatprep.subr.bf16.mxu1 %v612_v39  ;;  %v769_v33 = vunpack.c.l.s8.bf16 %v305_v31  ;;  %v310_v39 = vld [vmem:[#allocation4 + $0x5a8] sm:$0xff]  ;;  %v264_v31 = vld [vmem:[#allocation4 + $0x438] sm:$0xff] }
 0x15c   :  { %1198 = vmatprep.subr.bf16.mxu0 %v738_v38  ;;  %v648_v38 = vunpack.c.h.s8.bf16 %v244_v55 }
 0x15d   :  { %1477 = vmatmul.mubr.bf16.vlgmr.msra.gmra.mrb[4].mxu1 %v2444_v22  ;;  %v750_v22 = vunpack.c.h.s8.bf16 %v294_v49 }
 0x15e   :  { %1190 = vmatmul.mubr.bf16.vlgmr.msra.gmra.mrb[0].mxu0 %v2460_v41  ;;  %1486 = vmatpush1.bf16.msra.mxu1 %v611_v44  ;;  %v652_v44 = vunpack.c.l.s8.bf16 %v248_v40 }
 0x15f   :  { %1199 = vmatpush1.bf16.msra.mxu0 %v737_v43  ;;  %1487 = vmatprep.subr.bf16.mxu1 %v616_v48  ;;  %v778_v43 = vunpack.c.l.s8.bf16 %v310_v39  ;;  %v247_v48 = vld [vmem:[#allocation4 + $0x3b0] sm:$0xff] }
 0x160   :  { %1200 = vmatprep.subr.bf16.mxu0 %v742_v45  ;;  %1230 = vmatprep.mubr.bf16.mxu0 %v2462_v37  ;;  %v309_v45 = vld [vmem:[#allocation4 + $0x5a0] sm:$0xff]  ;;  %v651_v50 = vunpack.c.l.s8.bf16 %v247_v48  ;;  %v655_v57 = vunpack.c.h.s8.bf16 %v247_v48 }
 0x161   :  { %1517 = vmatprep.mubr.bf16.mxu1 %v2446_v30  ;;  %v235_v30 = vld [vmem:[#allocation4 + $0x350] sm:$0xff]  ;;  %v777_v49 = vunpack.c.l.s8.bf16 %v309_v45  ;;  %v781_v56 = vunpack.c.h.s8.bf16 %v309_v45  ;;  %v268_v45 = vld [vmem:[#allocation4 + $0x458] sm:$0xff] }
 0x162   :  { %1488 = vmatpush1.bf16.msra.mxu1 %v615_v52  ;;  %v627_v6 = vunpack.c.l.s8.bf16 %v235_v30  ;;  %v631_v12 = vunpack.c.h.s8.bf16 %v235_v30  ;;  %v656_v52 = vunpack.c.h.s8.bf16 %v248_v40  ;;  %v263_v40 = vld [vmem:[#allocation4 + $0x430] sm:$0xff] }
 0x163   :  { %1201 = vmatpush1.bf16.msra.mxu0 %v741_v51  ;;  %1489 = vmatprep.subr.bf16.mxu1 %v620_v54  ;;  %v782_v51 = vunpack.c.h.s8.bf16 %v310_v39  ;;  %v252_v54 = vld [vmem:[#allocation4 + $0x3d8] sm:$0xff]  ;;  %v325_v39 = vld [vmem:[#allocation4 + $0x620] sm:$0xff] }
 0x164   :  { %1202 = vmatprep.subr.bf16.mxu0 %v746_v53  ;;  %v314_v53 = vld [vmem:[#allocation4 + $0x5c8] sm:$0xff]  ;;  %v813_v48 = vunpack.c.h.s8.bf16 %v325_v39 }
 0x166   :  { %1490 = vmatpush1.bf16.msra.mxu1 %v619_v59  ;;  %v660_v59 = vunpack.c.l.s8.bf16 %v252_v54 }
 0x167   :  { %1203 = vmatpush1.bf16.msra.mxu0 %v745_v58  ;;  %1491 = vmatprep.subr.bf16.mxu1 %v624_v60  ;;  %v786_v58 = vunpack.c.l.s8.bf16 %v314_v53  ;;  %v251_v60 = vld [vmem:[#allocation4 + $0x3d0] sm:$0xff] }
 0x168   :  { %1204 = vmatprep.subr.bf16.mxu0 %v750_v22  ;;  %v313_v22 = vld [vmem:[#allocation4 + $0x5c0] sm:$0xff]  ;;  %v659_v62 = vunpack.c.l.s8.bf16 %v251_v60  ;;  %v663_v30 = vunpack.c.h.s8.bf16 %v251_v60 }
 0x169   :  { %v785_v61 = vunpack.c.l.s8.bf16 %v313_v22  ;;  %v789_v4 = vunpack.c.h.s8.bf16 %v313_v22 }
 0x16a   :  { %1492 = vmatpush1.bf16.msra.mxu1 %v623_v0  ;;  %v664_v0 = vunpack.c.h.s8.bf16 %v252_v54 }
 0x16b   :  { %1205 = vmatpush1.bf16.msra.mxu0 %v749_v63  ;;  %1493 = vmatprep.subr.bf16.mxu1 %v628_v3  ;;  %v790_v63 = vunpack.c.h.s8.bf16 %v314_v53  ;;  %v256_v3 = vld [vmem:[#allocation4 + $0x3f8] sm:$0xff] }
 0x16c   :  { %1206 = vmatprep.subr.bf16.mxu0 %v754_v2  ;;  %v318_v2 = vld [vmem:[#allocation4 + $0x5e8] sm:$0xff] }
 0x16e   :  { %1494 = vmatpush1.bf16.msra.mxu1 %v627_v6  ;;  %v668_v6 = vunpack.c.l.s8.bf16 %v256_v3 }
 0x16f   :  { %1207 = vmatpush1.bf16.msra.mxu0 %v753_v5  ;;  %1495 = vmatprep.subr.bf16.mxu1 %v632_v8  ;;  %v794_v5 = vunpack.c.l.s8.bf16 %v318_v2  ;;  %v255_v8 = vld [vmem:[#allocation4 + $0x3f0] sm:$0xff] }
 0x170   :  { %1208 = vmatprep.subr.bf16.mxu0 %v758_v7  ;;  %v2468_v47 = vpop.f32.mrb[0].mxu1  ;;  %v317_v7 = vld [vmem:[#allocation4 + $0x5e0] sm:$0xff]  ;;  %v667_v10 = vunpack.c.l.s8.bf16 %v255_v8  ;;  %v671_v16 = vunpack.c.h.s8.bf16 %v255_v8 }
 0x171   :  { %v2470_v17 = vpop.f32.mrb[1].mxu1  ;;  %v793_v9 = vunpack.c.l.s8.bf16 %v317_v7  ;;  %v797_v15 = vunpack.c.h.s8.bf16 %v317_v7 }
 0x172   :  { %v1031_v18 = vpop.f32.mrb[2].mxu1  ;;  %1496 = vmatpush1.bf16.msra.mxu1 %v631_v12  ;;  %v672_v12 = vunpack.c.h.s8.bf16 %v256_v3 }
 0x173   :  { %1209 = vmatpush1.bf16.msra.mxu0 %v757_v11  ;;  %v1032_v21 = vpop.f32.mrb[3].mxu1  ;;  %1497 = vmatprep.subr.bf16.mxu1 %v636_v14  ;;  %v798_v11 = vunpack.c.h.s8.bf16 %v318_v2  ;;  %v260_v14 = vld [vmem:[#allocation4 + $0x418] sm:$0xff]  ;;  %v103_v18 = vld [vmem:[#allocation2 + $0x50] sm:$0xff] }
 0x174   :  { %1210 = vmatprep.subr.bf16.mxu0 %v762_v13  ;;  %v322_v13 = vld [vmem:[#allocation4 + $0x608] sm:$0xff]  ;;  %v321_v21 = vld [vmem:[#allocation4 + $0x600] sm:$0xff] }
 0x175   :  { %v801_v55 = vunpack.c.l.s8.bf16 %v321_v21 }
 0x176   :  { %1498 = vmatpush1.bf16.msra.mxu1 %v635_v20  ;;  %v676_v20 = vunpack.c.l.s8.bf16 %v260_v14 }
 0x177   :  { %1211 = vmatpush1.bf16.msra.mxu0 %v761_v19  ;;  %1499 = vmatprep.subr.bf16.mxu1 %v640_v24  ;;  %v802_v19 = vunpack.c.l.s8.bf16 %v322_v13  ;;  %v2472_v24 = vpack.c.bf16 %v103_v18, %v103_v18  ;;  %v342_v18 = vld [vmem:[#allocation4 + $0x6a8] sm:$0xff] }
 0x178   :  { %1212 = vmatprep.subr.bf16.mxu0 %v766_v23  ;;  %v259_v23 = vld [vmem:[#allocation4 + $0x410] sm:$0xff] }
 0x17a   :  { %1500 = vmatpush1.bf16.msra.mxu1 %v639_v27  ;;  %v806_v27 = vunpack.c.h.s8.bf16 %v322_v13 }
 0x17b   :  { %1213 = vmatpush1.bf16.msra.mxu0 %v765_v26  ;;  %1501 = vmatprep.subr.bf16.mxu1 %v644_v29  ;;  %v675_v26 = vunpack.c.l.s8.bf16 %v259_v23  ;;  %v326_v29 = vld [vmem:[#allocation4 + $0x628] sm:$0xff] }
 0x17c   :  { %1214 = vmatprep.subr.bf16.mxu0 %v770_v28  ;;  %v680_v28 = vunpack.c.h.s8.bf16 %v260_v14 }
 0x17e   :  { %1502 = vmatpush1.bf16.msra.mxu1 %v643_v34  ;;  %v679_v34 = vunpack.c.h.s8.bf16 %v259_v23  ;;  %v842_v23 = vunpack.c.l.s8.bf16 %v342_v18 }
 0x17f   :  { %1215 = vmatpush1.bf16.msra.mxu0 %v769_v33  ;;  %1503 = vmatprep.subr.bf16.mxu1 %v648_v38  ;;  %v805_v33 = vunpack.c.h.s8.bf16 %v321_v21  ;;  %v684_v38 = vunpack.c.l.s8.bf16 %v264_v31 }
 0x180   :  { %1216 = vmatprep.subr.bf16.mxu0 %v774_v35  ;;  %v810_v35 = vunpack.c.l.s8.bf16 %v326_v29 }
 0x182   :  { %1504 = vmatpush1.bf16.msra.mxu1 %v647_v42  ;;  %v683_v42 = vunpack.c.l.s8.bf16 %v263_v40 }
 0x183   :  { %1217 = vmatpush1.bf16.msra.mxu0 %v773_v46  ;;  %1505 = vmatprep.subr.bf16.mxu1 %v652_v44  ;;  %v809_v46 = vunpack.c.l.s8.bf16 %v325_v39  ;;  %v330_v44 = vld [vmem:[#allocation4 + $0x648] sm:$0xff] }
 0x184   :  { %1218 = vmatprep.subr.bf16.mxu0 %v778_v43  ;;  %v688_v43 = vunpack.c.h.s8.bf16 %v264_v31 }
 0x186   :  { %1506 = vmatpush1.bf16.msra.mxu1 %v651_v50  ;;  %v818_v50 = vunpack.c.l.s8.bf16 %v330_v44 }
 0x187   :  { %1219 = vmatpush1.bf16.msra.mxu0 %v777_v49  ;;  %1507 = vmatprep.subr.bf16.mxu1 %v656_v52  ;;  %v687_v49 = vunpack.c.h.s8.bf16 %v263_v40  ;;  %v329_v52 = vld [vmem:[#allocation4 + $0x640] sm:$0xff] }
 0x188   :  { %1220 = vmatprep.subr.bf16.mxu0 %v782_v51  ;;  %v692_v51 = vunpack.c.l.s8.bf16 %v268_v45  ;;  %v817_v53 = vunpack.c.l.s8.bf16 %v329_v52  ;;  %v821_v22 = vunpack.c.h.s8.bf16 %v329_v52 }
 0x18a   :  { %1508 = vmatpush1.bf16.msra.mxu1 %v655_v57  ;;  %v696_v57 = vunpack.c.h.s8.bf16 %v268_v45 }
 0x18b   :  { %1221 = vmatpush1.bf16.msra.mxu0 %v781_v56  ;;  %1509 = vmatprep.subr.bf16.mxu1 %v660_v59  ;;  %v822_v56 = vunpack.c.h.s8.bf16 %v330_v44  ;;  %v272_v59 = vld [vmem:[#allocation4 + $0x478] sm:$0xff] }
 0x18c   :  { %1222 = vmatprep.subr.bf16.mxu0 %v786_v58  ;;  %v334_v58 = vld [vmem:[#allocation4 + $0x668] sm:$0xff] }
 0x18e   :  { %1510 = vmatpush1.bf16.msra.mxu1 %v659_v62  ;;  %v700_v62 = vunpack.c.l.s8.bf16 %v272_v59 }
 0x18f   :  { %1223 = vmatpush1.bf16.msra.mxu0 %v785_v61  ;;  %1511 = vmatprep.subr.bf16.mxu1 %v664_v0  ;;  %v826_v61 = vunpack.c.l.s8.bf16 %v334_v58  ;;  %v271_v0 = vld [vmem:[#allocation4 + $0x470] sm:$0xff] }
 0x190   :  { %1224 = vmatprep.subr.bf16.mxu0 %v790_v63  ;;  %v333_v63 = vld [vmem:[#allocation4 + $0x660] sm:$0xff]  ;;  %v699_v3 = vunpack.c.l.s8.bf16 %v271_v0  ;;  %v703_v8 = vunpack.c.h.s8.bf16 %v271_v0 }
 0x191   :  { %v825_v2 = vunpack.c.l.s8.bf16 %v333_v63  ;;  %v829_v7 = vunpack.c.h.s8.bf16 %v333_v63  ;;  %v105_v63 = vld [vmem:[#allocation2 + $0x60] sm:$0xff] }
 0x192   :  { %1512 = vmatpush1.bf16.msra.mxu1 %v663_v30  ;;  %v704_v30 = vunpack.c.h.s8.bf16 %v272_v59 }
 0x193   :  { %1225 = vmatpush1.bf16.msra.mxu0 %v789_v4  ;;  %1513 = vmatprep.subr.bf16.mxu1 %v668_v6  ;;  %v830_v4 = vunpack.c.h.s8.bf16 %v334_v58  ;;  %v276_v6 = vld [vmem:[#allocation4 + $0x498] sm:$0xff] }
 0x194   :  { %1226 = vmatprep.subr.bf16.mxu0 %v794_v5  ;;  %v338_v5 = vld [vmem:[#allocation4 + $0x688] sm:$0xff] }
 0x196   :  { %1514 = vmatpush1.bf16.msra.mxu1 %v667_v10  ;;  %v708_v10 = vunpack.c.l.s8.bf16 %v276_v6 }
 0x197   :  { %1227 = vmatpush1.bf16.msra.mxu0 %v793_v9  ;;  %1515 = vmatprep.subr.bf16.mxu1 %v672_v12  ;;  %v834_v9 = vunpack.c.l.s8.bf16 %v338_v5  ;;  %v275_v12 = vld [vmem:[#allocation4 + $0x490] sm:$0xff] }
 0x198   :  { %1228 = vmatprep.subr.bf16.mxu0 %v798_v11  ;;  %v337_v11 = vld [vmem:[#allocation4 + $0x680] sm:$0xff]  ;;  %v707_v14 = vunpack.c.l.s8.bf16 %v275_v12  ;;  %v711_v21 = vunpack.c.h.s8.bf16 %v275_v12 }
 0x199   :  { %v833_v13 = vunpack.c.l.s8.bf16 %v337_v11 }
 0x19a   :  { %1516 = vmatpush1.bf16.msra.mxu1 %v671_v16  ;;  %v712_v16 = vunpack.c.h.s8.bf16 %v276_v6 }
 0x19b   :  { %1229 = vmatpush1.bf16.msra.mxu0 %v797_v15  ;;  %1526 = vmatprep.subr.bf16.mxu1 %v676_v20  ;;  %v838_v15 = vunpack.c.h.s8.bf16 %v338_v5  ;;  %v837_v20 = vunpack.c.h.s8.bf16 %v337_v11  ;;  %v108_v5 = vld [vmem:[#allocation2 + $0x78] sm:$0xff]  ;;  %v296_v11 = vld [vmem:[#allocation4 + $0x538] sm:$0xff] }
 0x19c   :  { %1239 = vmatprep.subr.bf16.mxu0 %v802_v19  ;;  %v280_v19 = vld [vmem:[#allocation4 + $0x4b8] sm:$0xff]  ;;  %v2482_v12 = vpack.c.bf16 %v108_v5, %v108_v5 }
 0x19d   :  { %1518 = vmatmul.mubr.bf16.vlgmr.msra.gmra.mrb[4].mxu1 %v2452_v1  ;;  %v814_v1 = vunpack.c.h.s8.bf16 %v326_v29  ;;  %v716_v25 = vunpack.c.l.s8.bf16 %v280_v19  ;;  %v846_v29 = vunpack.c.h.s8.bf16 %v342_v18  ;;  %v720_v31 = vunpack.c.h.s8.bf16 %v280_v19  ;;  %v357_v18 = vld [vmem:[#allocation4 + $0x720] sm:$0xff]  ;;  %v295_v19 = vld [vmem:[#allocation4 + $0x530] sm:$0xff] }
 0x19e   :  { %1231 = vmatmul.mubr.bf16.vlgmr.msra.gmra.mrb[0].mxu0 %v2472_v24  ;;  %1527 = vmatpush1.bf16.msra.mxu1 %v675_v26  ;;  %v279_v26 = vld [vmem:[#allocation4 + $0x4b0] sm:$0xff] }
 0x19f   :  { %1240 = vmatpush1.bf16.msra.mxu0 %v801_v55  ;;  %1528 = vmatprep.subr.bf16.mxu1 %v680_v28  ;;  %v341_v55 = vld [vmem:[#allocation4 + $0x6a0] sm:$0xff]  ;;  %v715_v28 = vunpack.c.l.s8.bf16 %v279_v26 }
 0x1a0   :  { %1241 = vmatprep.subr.bf16.mxu0 %v806_v27  ;;  %1271 = vmatprep.mubr.bf16.mxu0 %v2474_v32  ;;  %v841_v27 = vunpack.c.l.s8.bf16 %v341_v55 }
 0x1a1   :  { %1558 = vmatprep.mubr.bf16.mxu1 %v2454_v36  ;;  %v267_v36 = vld [vmem:[#allocation4 + $0x450] sm:$0xff] }
 0x1a2   :  { %1529 = vmatpush1.bf16.msra.mxu1 %v679_v34  ;;  %v691_v54 = vunpack.c.l.s8.bf16 %v267_v36  ;;  %v695_v60 = vunpack.c.h.s8.bf16 %v267_v36  ;;  %v284_v34 = vld [vmem:[#allocation4 + $0x4d8] sm:$0xff] }
 0x1a3   :  { %1242 = vmatpush1.bf16.msra.mxu0 %v805_v33  ;;  %1530 = vmatprep.subr.bf16.mxu1 %v684_v38  ;;  %v346_v33 = vld [vmem:[#allocation4 + $0x6c8] sm:$0xff]  ;;  %v719_v38 = vunpack.c.h.s8.bf16 %v279_v26  ;;  %v724_v40 = vunpack.c.l.s8.bf16 %v284_v34  ;;  %v728_v45 = vunpack.c.h.s8.bf16 %v284_v34  ;;  %v877_v26 = vunpack.c.h.s8.bf16 %v357_v18 }
 0x1a4   :  { %1243 = vmatprep.subr.bf16.mxu0 %v810_v35  ;;  %v845_v35 = vunpack.c.h.s8.bf16 %v341_v55  ;;  %v850_v39 = vunpack.c.l.s8.bf16 %v346_v33  ;;  %v854_v44 = vunpack.c.h.s8.bf16 %v346_v33  ;;  %v300_v55 = vld [vmem:[#allocation4 + $0x558] sm:$0xff] }
 0x1a6   :  { %1531 = vmatpush1.bf16.msra.mxu1 %v683_v42  ;;  %v283_v42 = vld [vmem:[#allocation4 + $0x4d0] sm:$0xff] }
 0x1a7   :  { %1244 = vmatpush1.bf16.msra.mxu0 %v809_v46  ;;  %1532 = vmatprep.subr.bf16.mxu1 %v688_v43  ;;  %v345_v46 = vld [vmem:[#allocation4 + $0x6c0] sm:$0xff]  ;;  %v723_v43 = vunpack.c.l.s8.bf16 %v283_v42 }
 0x1a8   :  { %1245 = vmatprep.subr.bf16.mxu0 %v814_v1  ;;  %v849_v1 = vunpack.c.l.s8.bf16 %v345_v46 }
 0x1aa   :  { %1533 = vmatpush1.bf16.msra.mxu1 %v687_v49  ;;  %v288_v49 = vld [vmem:[#allocation4 + $0x4f8] sm:$0xff] }
 0x1ab   :  { %1246 = vmatpush1.bf16.msra.mxu0 %v813_v48  ;;  %1534 = vmatprep.subr.bf16.mxu1 %v692_v51  ;;  %v350_v48 = vld [vmem:[#allocation4 + $0x6e8] sm:$0xff]  ;;  %v727_v51 = vunpack.c.h.s8.bf16 %v283_v42  ;;  %v732_v36 = vunpack.c.l.s8.bf16 %v288_v49  ;;  %v736_v59 = vunpack.c.h.s8.bf16 %v288_v49 }
 0x1ac   :  { %1247 = vmatprep.subr.bf16.mxu0 %v818_v50  ;;  %v853_v50 = vunpack.c.h.s8.bf16 %v345_v46  ;;  %v858_v52 = vunpack.c.l.s8.bf16 %v350_v48  ;;  %v862_v58 = vunpack.c.h.s8.bf16 %v350_v48 }
 0x1ae   :  { %1535 = vmatpush1.bf16.msra.mxu1 %v691_v54  ;;  %v287_v54 = vld [vmem:[#allocation4 + $0x4f0] sm:$0xff] }
 0x1af   :  { %1248 = vmatpush1.bf16.msra.mxu0 %v817_v53  ;;  %1536 = vmatprep.subr.bf16.mxu1 %v696_v57  ;;  %v349_v53 = vld [vmem:[#allocation4 + $0x6e0] sm:$0xff]  ;;  %v731_v57 = vunpack.c.l.s8.bf16 %v287_v54 }
 0x1b0   :  { %1249 = vmatprep.subr.bf16.mxu0 %v822_v56  ;;  %v857_v56 = vunpack.c.l.s8.bf16 %v349_v53 }
 0x1b2   :  { %1537 = vmatpush1.bf16.msra.mxu1 %v695_v60  ;;  %v292_v60 = vld [vmem:[#allocation4 + $0x518] sm:$0xff] }
 0x1b3   :  { %1250 = vmatpush1.bf16.msra.mxu0 %v821_v22  ;;  %1538 = vmatprep.subr.bf16.mxu1 %v700_v62  ;;  %v354_v22 = vld [vmem:[#allocation4 + $0x708] sm:$0xff]  ;;  %v735_v62 = vunpack.c.h.s8.bf16 %v287_v54 }
 0x1b4   :  { %1251 = vmatprep.subr.bf16.mxu0 %v826_v61  ;;  %v861_v61 = vunpack.c.h.s8.bf16 %v349_v53  ;;  %v866_v0 = vunpack.c.l.s8.bf16 %v354_v22 }
 0x1b6   :  { %1539 = vmatpush1.bf16.msra.mxu1 %v699_v3  ;;  %v353_v3 = vld [vmem:[#allocation4 + $0x700] sm:$0xff] }
 0x1b7   :  { %1252 = vmatpush1.bf16.msra.mxu0 %v825_v2  ;;  %1540 = vmatprep.subr.bf16.mxu1 %v704_v30  ;;  %v740_v2 = vunpack.c.l.s8.bf16 %v292_v60  ;;  %v2480_v30 = vpack.c.bf16 %v105_v63, %v105_v63  ;;  %v865_v6 = vunpack.c.l.s8.bf16 %v353_v3  ;;  %v374_v63 = vld [vmem:[#allocation4 + $0x7a8] sm:$0xff] }
 0x1b8   :  { %1253 = vmatprep.subr.bf16.mxu0 %v830_v4  ;;  %v291_v4 = vld [vmem:[#allocation4 + $0x510] sm:$0xff] }
 0x1ba   :  { %1541 = vmatpush1.bf16.msra.mxu1 %v703_v8  ;;  %v870_v8 = vunpack.c.h.s8.bf16 %v354_v22 }
 0x1bb   :  { %1254 = vmatpush1.bf16.msra.mxu0 %v829_v7  ;;  %1542 = vmatprep.subr.bf16.mxu1 %v708_v10  ;;  %v739_v7 = vunpack.c.l.s8.bf16 %v291_v4  ;;  %v358_v10 = vld [vmem:[#allocation4 + $0x728] sm:$0xff] }
 0x1bc   :  { %1255 = vmatprep.subr.bf16.mxu0 %v834_v9  ;;  %v744_v9 = vunpack.c.h.s8.bf16 %v292_v60 }
 0x1be   :  { %1543 = vmatpush1.bf16.msra.mxu1 %v707_v14  ;;  %v743_v14 = vunpack.c.h.s8.bf16 %v291_v4  ;;  %v906_v4 = vunpack.c.l.s8.bf16 %v374_v63 }
 0x1bf   :  { %1256 = vmatpush1.bf16.msra.mxu0 %v833_v13  ;;  %1544 = vmatprep.subr.bf16.mxu1 %v712_v16  ;;  %v869_v13 = vunpack.c.h.s8.bf16 %v353_v3  ;;  %v748_v16 = vunpack.c.l.s8.bf16 %v296_v11 }
 0x1c0   :  { %1257 = vmatprep.subr.bf16.mxu0 %v838_v15  ;;  %v874_v15 = vunpack.c.l.s8.bf16 %v358_v10 }
 0x1c2   :  { %1545 = vmatpush1.bf16.msra.mxu1 %v711_v21  ;;  %v747_v21 = vunpack.c.l.s8.bf16 %v295_v19 }
 0x1c3   :  { %1258 = vmatpush1.bf16.msra.mxu0 %v837_v20  ;;  %1546 = vmatprep.subr.bf16.mxu1 %v716_v25  ;;  %v873_v20 = vunpack.c.l.s8.bf16 %v357_v18  ;;  %v362_v25 = vld [vmem:[#allocation4 + $0x748] sm:$0xff] }
 0x1c4   :  { %1259 = vmatprep.subr.bf16.mxu0 %v842_v23  ;;  %v752_v23 = vunpack.c.h.s8.bf16 %v296_v11 }
 0x1c6   :  { %1547 = vmatpush1.bf16.msra.mxu1 %v715_v28  ;;  %v882_v28 = vunpack.c.l.s8.bf16 %v362_v25 }
 0x1c7   :  { %1260 = vmatpush1.bf16.msra.mxu0 %v841_v27  ;;  %1548 = vmatprep.subr.bf16.mxu1 %v720_v31  ;;  %v751_v27 = vunpack.c.h.s8.bf16 %v295_v19  ;;  %v361_v31 = vld [vmem:[#allocation4 + $0x740] sm:$0xff] }
 0x1c8   :  { %1261 = vmatprep.subr.bf16.mxu0 %v846_v29  ;;  %v756_v29 = vunpack.c.l.s8.bf16 %v300_v55  ;;  %v881_v33 = vunpack.c.l.s8.bf16 %v361_v31  ;;  %v885_v46 = vunpack.c.h.s8.bf16 %v361_v31 }
 0x1ca   :  { %1549 = vmatpush1.bf16.msra.mxu1 %v719_v38  ;;  %v760_v38 = vunpack.c.h.s8.bf16 %v300_v55 }
 0x1cb   :  { %1262 = vmatpush1.bf16.msra.mxu0 %v845_v35  ;;  %1550 = vmatprep.subr.bf16.mxu1 %v724_v40  ;;  %v886_v35 = vunpack.c.h.s8.bf16 %v362_v25  ;;  %v304_v40 = vld [vmem:[#allocation4 + $0x578] sm:$0xff] }
 0x1cc   :  { %1263 = vmatprep.subr.bf16.mxu0 %v850_v39  ;;  %v366_v39 = vld [vmem:[#allocation4 + $0x768] sm:$0xff] }
 0x1ce   :  { %1551 = vmatpush1.bf16.msra.mxu1 %v723_v43  ;;  %v764_v43 = vunpack.c.l.s8.bf16 %v304_v40 }
 0x1cf   :  { %1264 = vmatpush1.bf16.msra.mxu0 %v849_v1  ;;  %1552 = vmatprep.subr.bf16.mxu1 %v728_v45  ;;  %v890_v1 = vunpack.c.l.s8.bf16 %v366_v39  ;;  %v303_v45 = vld [vmem:[#allocation4 + $0x570] sm:$0xff] }
 0x1d0   :  { %1265 = vmatprep.subr.bf16.mxu0 %v854_v44  ;;  %v365_v44 = vld [vmem:[#allocation4 + $0x760] sm:$0xff]  ;;  %v763_v49 = vunpack.c.l.s8.bf16 %v303_v45  ;;  %v767_v54 = vunpack.c.h.s8.bf16 %v303_v45 }
 0x1d1   :  { %v889_v48 = vunpack.c.l.s8.bf16 %v365_v44  ;;  %v893_v53 = vunpack.c.h.s8.bf16 %v365_v44  ;;  %v107_v44 = vld [vmem:[#allocation2 + $0x70] sm:$0xff] }
 0x1d2   :  { %1553 = vmatpush1.bf16.msra.mxu1 %v727_v51  ;;  %v768_v51 = vunpack.c.h.s8.bf16 %v304_v40 }
 0x1d3   :  { %1266 = vmatpush1.bf16.msra.mxu0 %v853_v50  ;;  %1554 = vmatprep.subr.bf16.mxu1 %v732_v36  ;;  %v894_v50 = vunpack.c.h.s8.bf16 %v366_v39  ;;  %v308_v36 = vld [vmem:[#allocation4 + $0x598] sm:$0xff] }
 0x1d4   :  { %1267 = vmatprep.subr.bf16.mxu0 %v858_v52  ;;  %v370_v52 = vld [vmem:[#allocation4 + $0x788] sm:$0xff] }
 0x1d6   :  { %1555 = vmatpush1.bf16.msra.mxu1 %v731_v57  ;;  %v772_v57 = vunpack.c.l.s8.bf16 %v308_v36 }
 0x1d7   :  { %1268 = vmatpush1.bf16.msra.mxu0 %v857_v56  ;;  %1556 = vmatprep.subr.bf16.mxu1 %v736_v59  ;;  %v898_v56 = vunpack.c.l.s8.bf16 %v370_v52  ;;  %v307_v59 = vld [vmem:[#allocation4 + $0x590] sm:$0xff] }
 0x1d8   :  { %1269 = vmatprep.subr.bf16.mxu0 %v862_v58  ;;  %v369_v58 = vld [vmem:[#allocation4 + $0x780] sm:$0xff]  ;;  %v771_v60 = vunpack.c.l.s8.bf16 %v307_v59  ;;  %v775_v3 = vunpack.c.h.s8.bf16 %v307_v59 }
 0x1d9   :  { %v897_v22 = vunpack.c.l.s8.bf16 %v369_v58 }
 0x1da   :  { %1557 = vmatpush1.bf16.msra.mxu1 %v735_v62  ;;  %v776_v62 = vunpack.c.h.s8.bf16 %v308_v36 }
 0x1db   :  { %1270 = vmatpush1.bf16.msra.mxu0 %v861_v61  ;;  %1567 = vmatprep.subr.bf16.mxu1 %v740_v2  ;;  %v902_v61 = vunpack.c.h.s8.bf16 %v370_v52  ;;  %v901_v2 = vunpack.c.h.s8.bf16 %v369_v58  ;;  %v110_v52 = vld [vmem:[#allocation2 + $0x88] sm:$0xff] }
 0x1dc   :  { %1280 = vmatprep.subr.bf16.mxu0 %v866_v0  ;;  %v312_v0 = vld [vmem:[#allocation4 + $0x5b8] sm:$0xff]  ;;  %v2490_v59 = vpack.c.bf16 %v110_v52, %v110_v52 }
 0x1dd   :  { %1559 = vmatmul.mubr.bf16.vlgmr.msra.gmra.mrb[4].mxu1 %v2460_v41  ;;  %v878_v41 = vunpack.c.h.s8.bf16 %v358_v10  ;;  %v780_v5 = vunpack.c.l.s8.bf16 %v312_v0  ;;  %v910_v10 = vunpack.c.h.s8.bf16 %v374_v63  ;;  %v784_v11 = vunpack.c.h.s8.bf16 %v312_v0  ;;  %v328_v58 = vld [vmem:[#allocation4 + $0x638] sm:$0xff]  ;;  %v389_v63 = vld [vmem:[#allocation4 + $0x820] sm:$0xff]  ;;  %v327_v0 = vld [vmem:[#allocation4 + $0x630] sm:$0xff] }
 0x1de   :  { %1272 = vmatmul.mubr.bf16.vlgmr.msra.gmra.mrb[0].mxu0 %v2480_v30  ;;  %1568 = vmatpush1.bf16.msra.mxu1 %v739_v7  ;;  %v311_v7 = vld [vmem:[#allocation4 + $0x5b0] sm:$0xff] }
 0x1df   :  { %1281 = vmatpush1.bf16.msra.mxu0 %v865_v6  ;;  %1569 = vmatprep.subr.bf16.mxu1 %v744_v9  ;;  %v373_v6 = vld [vmem:[#allocation4 + $0x7a0] sm:$0xff]  ;;  %v779_v9 = vunpack.c.l.s8.bf16 %v311_v7 }
 0x1e0   :  { %1282 = vmatprep.subr.bf16.mxu0 %v870_v8  ;;  %1312 = vmatprep.mubr.bf16.mxu0 %v2482_v12  ;;  %v905_v8 = vunpack.c.l.s8.bf16 %v373_v6 }
 0x1e1   :  { %1599 = vmatprep.mubr.bf16.mxu1 %v2462_v37  ;;  %v299_v37 = vld [vmem:[#allocation4 + $0x550] sm:$0xff] }
 0x1e2   :  { %1570 = vmatpush1.bf16.msra.mxu1 %v743_v14  ;;  %v755_v34 = vunpack.c.l.s8.bf16 %v299_v37  ;;  %v759_v42 = vunpack.c.h.s8.bf16 %v299_v37  ;;  %v316_v14 = vld [vmem:[#allocation4 + $0x5d8] sm:$0xff] }
 0x1e3   :  { %1283 = vmatpush1.bf16.msra.mxu0 %v869_v13  ;;  %1571 = vmatprep.subr.bf16.mxu1 %v748_v16  ;;  %v378_v13 = vld [vmem:[#allocation4 + $0x7c8] sm:$0xff]  ;;  %v783_v16 = vunpack.c.h.s8.bf16 %v311_v7  ;;  %v788_v19 = vunpack.c.l.s8.bf16 %v316_v14  ;;  %v792_v55 = vunpack.c.h.s8.bf16 %v316_v14  ;;  %v941_v7 = vunpack.c.h.s8.bf16 %v389_v63 }
 0x1e4   :  { %1284 = vmatprep.subr.bf16.mxu0 %v874_v15  ;;  %v909_v15 = vunpack.c.h.s8.bf16 %v373_v6  ;;  %v914_v18 = vunpack.c.l.s8.bf16 %v378_v13  ;;  %v918_v25 = vunpack.c.h.s8.bf16 %v378_v13  ;;  %v332_v6 = vld [vmem:[#allocation4 + $0x658] sm:$0xff] }
 0x1e6   :  { %1572 = vmatpush1.bf16.msra.mxu1 %v747_v21  ;;  %v315_v21 = vld [vmem:[#allocation4 + $0x5d0] sm:$0xff] }
 0x1e7   :  { %1285 = vmatpush1.bf16.msra.mxu0 %v873_v20  ;;  %1573 = vmatprep.subr.bf16.mxu1 %v752_v23  ;;  %v377_v20 = vld [vmem:[#allocation4 + $0x7c0] sm:$0xff]  ;;  %v787_v23 = vunpack.c.l.s8.bf16 %v315_v21 }
 0x1e8   :  { %1286 = vmatprep.subr.bf16.mxu0 %v878_v41  ;;  %v913_v41 = vunpack.c.l.s8.bf16 %v377_v20 }
 0x1ea   :  { %1574 = vmatpush1.bf16.msra.mxu1 %v751_v27  ;;  %v320_v27 = vld [vmem:[#allocation4 + $0x5f8] sm:$0xff] }
 0x1eb   :  { %1287 = vmatpush1.bf16.msra.mxu0 %v877_v26  ;;  %1575 = vmatprep.subr.bf16.mxu1 %v756_v29  ;;  %v382_v26 = vld [vmem:[#allocation4 + $0x7e8] sm:$0xff]  ;;  %v791_v29 = vunpack.c.h.s8.bf16 %v315_v21  ;;  %v796_v37 = vunpack.c.l.s8.bf16 %v320_v27  ;;  %v800_v40 = vunpack.c.h.s8.bf16 %v320_v27 }
 0x1ec   :  { %1288 = vmatprep.subr.bf16.mxu0 %v882_v28  ;;  %v917_v28 = vunpack.c.h.s8.bf16 %v377_v20  ;;  %v922_v31 = vunpack.c.l.s8.bf16 %v382_v26  ;;  %v926_v39 = vunpack.c.h.s8.bf16 %v382_v26 }
 0x1ee   :  { %1576 = vmatpush1.bf16.msra.mxu1 %v755_v34  ;;  %v319_v34 = vld [vmem:[#allocation4 + $0x5f0] sm:$0xff] }
 0x1ef   :  { %1289 = vmatpush1.bf16.msra.mxu0 %v881_v33  ;;  %1577 = vmatprep.subr.bf16.mxu1 %v760_v38  ;;  %v381_v33 = vld [vmem:[#allocation4 + $0x7e0] sm:$0xff]  ;;  %v795_v38 = vunpack.c.l.s8.bf16 %v319_v34 }
 0x1f0   :  { %1290 = vmatprep.subr.bf16.mxu0 %v886_v35  ;;  %v921_v35 = vunpack.c.l.s8.bf16 %v381_v33 }
 0x1f2   :  { %1578 = vmatpush1.bf16.msra.mxu1 %v759_v42  ;;  %v324_v42 = vld [vmem:[#allocation4 + $0x618] sm:$0xff] }
 0x1f3   :  { %1291 = vmatpush1.bf16.msra.mxu0 %v885_v46  ;;  %1579 = vmatprep.subr.bf16.mxu1 %v764_v43  ;;  %v386_v46 = vld [vmem:[#allocation4 + $0x808] sm:$0xff]  ;;  %v799_v43 = vunpack.c.h.s8.bf16 %v319_v34 }
 0x1f4   :  { %1292 = vmatprep.subr.bf16.mxu0 %v890_v1  ;;  %v925_v1 = vunpack.c.h.s8.bf16 %v381_v33  ;;  %v930_v45 = vunpack.c.l.s8.bf16 %v386_v46 }
 0x1f6   :  { %1580 = vmatpush1.bf16.msra.mxu1 %v763_v49  ;;  %v385_v49 = vld [vmem:[#allocation4 + $0x800] sm:$0xff] }
 0x1f7   :  { %1293 = vmatpush1.bf16.msra.mxu0 %v889_v48  ;;  %1581 = vmatprep.subr.bf16.mxu1 %v768_v51  ;;  %v804_v48 = vunpack.c.l.s8.bf16 %v324_v42  ;;  %v2488_v51 = vpack.c.bf16 %v107_v44, %v107_v44  ;;  %v929_v36 = vunpack.c.l.s8.bf16 %v385_v49  ;;  %v406_v44 = vld [vmem:[#allocation4 + $0x8a8] sm:$0xff] }
 0x1f8   :  { %1294 = vmatprep.subr.bf16.mxu0 %v894_v50  ;;  %v323_v50 = vld [vmem:[#allocation4 + $0x610] sm:$0xff] }
 0x1fa   :  { %1582 = vmatpush1.bf16.msra.mxu1 %v767_v54  ;;  %v934_v54 = vunpack.c.h.s8.bf16 %v386_v46 }
 0x1fb   :  { %1295 = vmatpush1.bf16.msra.mxu0 %v893_v53  ;;  %1583 = vmatprep.subr.bf16.mxu1 %v772_v57  ;;  %v803_v53 = vunpack.c.l.s8.bf16 %v323_v50  ;;  %v390_v57 = vld [vmem:[#allocation4 + $0x828] sm:$0xff] }
 0x1fc   :  { %1296 = vmatprep.subr.bf16.mxu0 %v898_v56  ;;  %v808_v56 = vunpack.c.h.s8.bf16 %v324_v42 }
 0x1fe   :  { %1584 = vmatpush1.bf16.msra.mxu1 %v771_v60  ;;  %v807_v60 = vunpack.c.h.s8.bf16 %v323_v50  ;;  %v970_v50 = vunpack.c.l.s8.bf16 %v406_v44 }
 0x1ff   :  { %1297 = vmatpush1.bf16.msra.mxu0 %v897_v22  ;;  %1585 = vmatprep.subr.bf16.mxu1 %v776_v62  ;;  %v933_v22 = vunpack.c.h.s8.bf16 %v385_v49  ;;  %v812_v62 = vunpack.c.l.s8.bf16 %v328_v58 }
 0x200   :  { %1298 = vmatprep.subr.bf16.mxu0 %v902_v61  ;;  %v938_v61 = vunpack.c.l.s8.bf16 %v390_v57 }
 0x202   :  { %1586 = vmatpush1.bf16.msra.mxu1 %v775_v3  ;;  %v811_v3 = vunpack.c.l.s8.bf16 %v327_v0 }
 0x203   :  { %1299 = vmatpush1.bf16.msra.mxu0 %v901_v2  ;;  %1587 = vmatprep.subr.bf16.mxu1 %v780_v5  ;;  %v937_v2 = vunpack.c.l.s8.bf16 %v389_v63  ;;  %v394_v5 = vld [vmem:[#allocation4 + $0x848] sm:$0xff] }
 0x204   :  { %1300 = vmatprep.subr.bf16.mxu0 %v906_v4  ;;  %v816_v4 = vunpack.c.h.s8.bf16 %v328_v58 }
 0x206   :  { %1588 = vmatpush1.bf16.msra.mxu1 %v779_v9  ;;  %v946_v9 = vunpack.c.l.s8.bf16 %v394_v5 }
 0x207   :  { %1301 = vmatpush1.bf16.msra.mxu0 %v905_v8  ;;  %1589 = vmatprep.subr.bf16.mxu1 %v784_v11  ;;  %v815_v8 = vunpack.c.h.s8.bf16 %v327_v0  ;;  %v393_v11 = vld [vmem:[#allocation4 + $0x840] sm:$0xff] }
 0x208   :  { %1302 = vmatprep.subr.bf16.mxu0 %v910_v10  ;;  %v820_v10 = vunpack.c.l.s8.bf16 %v332_v6  ;;  %v945_v13 = vunpack.c.l.s8.bf16 %v393_v11  ;;  %v949_v20 = vunpack.c.h.s8.bf16 %v393_v11 }
 0x20a   :  { %1590 = vmatpush1.bf16.msra.mxu1 %v783_v16  ;;  %v824_v16 = vunpack.c.h.s8.bf16 %v332_v6 }
 0x20b   :  { %1303 = vmatpush1.bf16.msra.mxu0 %v909_v15  ;;  %1591 = vmatprep.subr.bf16.mxu1 %v788_v19  ;;  %v950_v15 = vunpack.c.h.s8.bf16 %v394_v5  ;;  %v336_v19 = vld [vmem:[#allocation4 + $0x678] sm:$0xff] }
 0x20c   :  { %1304 = vmatprep.subr.bf16.mxu0 %v914_v18  ;;  %v398_v18 = vld [vmem:[#allocation4 + $0x868] sm:$0xff] }
 0x20e   :  { %1592 = vmatpush1.bf16.msra.mxu1 %v787_v23  ;;  %v828_v23 = vunpack.c.l.s8.bf16 %v336_v19 }
 0x20f   :  { %1305 = vmatpush1.bf16.msra.mxu0 %v913_v41  ;;  %1593 = vmatprep.subr.bf16.mxu1 %v792_v55  ;;  %v954_v41 = vunpack.c.l.s8.bf16 %v398_v18  ;;  %v335_v55 = vld [vmem:[#allocation4 + $0x670] sm:$0xff] }
 0x210   :  { %1306 = vmatprep.subr.bf16.mxu0 %v918_v25  ;;  %v397_v25 = vld [vmem:[#allocation4 + $0x860] sm:$0xff]  ;;  %v827_v27 = vunpack.c.l.s8.bf16 %v335_v55  ;;  %v831_v34 = vunpack.c.h.s8.bf16 %v335_v55  ;;  %v355_v55 = vld [vmem:[#allocation4 + $0x710] sm:$0xff] }
 0x211   :  { %v953_v26 = vunpack.c.l.s8.bf16 %v397_v25  ;;  %v957_v33 = vunpack.c.h.s8.bf16 %v397_v25 }
 0x212   :  { %1594 = vmatpush1.bf16.msra.mxu1 %v791_v29  ;;  %v832_v29 = vunpack.c.h.s8.bf16 %v336_v19 }
 0x213   :  { %1307 = vmatpush1.bf16.msra.mxu0 %v917_v28  ;;  %1595 = vmatprep.subr.bf16.mxu1 %v796_v37  ;;  %v958_v28 = vunpack.c.h.s8.bf16 %v398_v18  ;;  %v340_v37 = vld [vmem:[#allocation4 + $0x698] sm:$0xff] }
 0x214   :  { %1308 = vmatprep.subr.bf16.mxu0 %v922_v31  ;;  %v402_v31 = vld [vmem:[#allocation4 + $0x888] sm:$0xff] }
 0x216   :  { %1596 = vmatpush1.bf16.msra.mxu1 %v795_v38  ;;  %v836_v38 = vunpack.c.l.s8.bf16 %v340_v37 }
 0x217   :  { %1309 = vmatpush1.bf16.msra.mxu0 %v921_v35  ;;  %1597 = vmatprep.subr.bf16.mxu1 %v800_v40  ;;  %v962_v35 = vunpack.c.l.s8.bf16 %v402_v31  ;;  %v339_v40 = vld [vmem:[#allocation4 + $0x690] sm:$0xff] }
 0x218   :  { %1310 = vmatprep.subr.bf16.mxu0 %v926_v39  ;;  %v401_v39 = vld [vmem:[#allocation4 + $0x880] sm:$0xff]  ;;  %v835_v42 = vunpack.c.l.s8.bf16 %v339_v40  ;;  %v839_v49 = vunpack.c.h.s8.bf16 %v339_v40  ;;  %v359_v40 = vld [vmem:[#allocation4 + $0x730] sm:$0xff] }
 0x219   :  { %v961_v46 = vunpack.c.l.s8.bf16 %v401_v39 }
 0x21a   :  { %1598 = vmatpush1.bf16.msra.mxu1 %v799_v43  ;;  %v840_v43 = vunpack.c.h.s8.bf16 %v340_v37  ;;  %v1789_v37 = vld [vmem:[#allocation6] sm:$0xff] }
 0x21b   :  { %1311 = vmatpush1.bf16.msra.mxu0 %v925_v1  ;;  %1608 = vmatprep.subr.bf16.mxu1 %v804_v48  ;;  %v966_v1 = vunpack.c.h.s8.bf16 %v402_v31  ;;  %v965_v48 = vunpack.c.h.s8.bf16 %v401_v39  ;;  %v1790_v31 = vld [vmem:[#allocation6 + $0x8] sm:$0xff] }
 0x21c   :  { %1321 = vmatprep.subr.bf16.mxu0 %v930_v45  ;;  %v344_v45 = vld [vmem:[#allocation4 + $0x6b8] sm:$0xff] }
 0x21d   :  { %1600 = vmatmul.mubr.bf16.vlgmr.msra.gmra.mrb[4].mxu1 %v2472_v24  ;;  %v942_v24 = vunpack.c.h.s8.bf16 %v390_v57  ;;  %v844_v52 = vunpack.c.l.s8.bf16 %v344_v45  ;;  %v974_v57 = vunpack.c.h.s8.bf16 %v406_v44  ;;  %v848_v58 = vunpack.c.h.s8.bf16 %v344_v45  ;;  %v364_v45 = vld [vmem:[#allocation4 + $0x758] sm:$0xff] }
 0x21e   :  { %1313 = vmatmul.mubr.bf16.vlgmr.msra.gmra.mrb[0].mxu0 %v2488_v51  ;;  %1609 = vmatpush1.bf16.msra.mxu1 %v803_v53  ;;  %v343_v53 = vld [vmem:[#allocation4 + $0x6b0] sm:$0xff] }
 0x21f   :  { %1322 = vmatpush1.bf16.msra.mxu0 %v929_v36  ;;  %1610 = vmatprep.subr.bf16.mxu1 %v808_v56  ;;  %v405_v36 = vld [vmem:[#allocation4 + $0x8a0] sm:$0xff]  ;;  %v843_v56 = vunpack.c.l.s8.bf16 %v343_v53 }
 0x220   :  { %1323 = vmatprep.subr.bf16.mxu0 %v934_v54  ;;  %1353 = vmatprep.mubr.bf16.mxu0 %v2490_v59  ;;  %v969_v54 = vunpack.c.l.s8.bf16 %v405_v36 }
 0x221   :  { %1640 = vmatprep.mubr.bf16.mxu1 %v2474_v32  ;;  %v331_v32 = vld [vmem:[#allocation4 + $0x650] sm:$0xff] }
 0x222   :  { %1611 = vmatpush1.bf16.msra.mxu1 %v807_v60  ;;  %v819_v14 = vunpack.c.l.s8.bf16 %v331_v32  ;;  %v823_v21 = vunpack.c.h.s8.bf16 %v331_v32  ;;  %v348_v60 = vld [vmem:[#allocation4 + $0x6d8] sm:$0xff] }
 0x223   :  { %1324 = vmatpush1.bf16.msra.mxu0 %v933_v22  ;;  %1612 = vmatprep.subr.bf16.mxu1 %v812_v62  ;;  %v410_v22 = vld [vmem:[#allocation4 + $0x8c8] sm:$0xff]  ;;  %v847_v62 = vunpack.c.h.s8.bf16 %v343_v53  ;;  %v852_v0 = vunpack.c.l.s8.bf16 %v348_v60  ;;  %v856_v6 = vunpack.c.h.s8.bf16 %v348_v60 }
 0x224   :  { %1325 = vmatprep.subr.bf16.mxu0 %v938_v61  ;;  %v973_v61 = vunpack.c.h.s8.bf16 %v405_v36  ;;  %v978_v63 = vunpack.c.l.s8.bf16 %v410_v22  ;;  %v982_v5 = vunpack.c.h.s8.bf16 %v410_v22  ;;  %v1794_v36 = vld [vmem:[#allocation6 + $0x28] sm:$0xff]  ;;  %v368_v22 = vld [vmem:[#allocation4 + $0x778] sm:$0xff] }
 0x226   :  { %1613 = vmatpush1.bf16.msra.mxu1 %v811_v3  ;;  %v347_v3 = vld [vmem:[#allocation4 + $0x6d0] sm:$0xff] }
 0x227   :  { %1326 = vmatpush1.bf16.msra.mxu0 %v937_v2  ;;  %1614 = vmatprep.subr.bf16.mxu1 %v816_v4  ;;  %v409_v2 = vld [vmem:[#allocation4 + $0x8c0] sm:$0xff]  ;;  %v851_v4 = vunpack.c.l.s8.bf16 %v347_v3 }
 0x228   :  { %1327 = vmatprep.subr.bf16.mxu0 %v942_v24  ;;  %v977_v24 = vunpack.c.l.s8.bf16 %v409_v2 }
 0x22a   :  { %1615 = vmatpush1.bf16.msra.mxu1 %v815_v8  ;;  %v352_v8 = vld [vmem:[#allocation4 + $0x6f8] sm:$0xff] }
 0x22b   :  { %1328 = vmatpush1.bf16.msra.mxu0 %v941_v7  ;;  %1616 = vmatprep.subr.bf16.mxu1 %v820_v10  ;;  %v414_v7 = vld [vmem:[#allocation4 + $0x8e8] sm:$0xff]  ;;  %v855_v10 = vunpack.c.h.s8.bf16 %v347_v3  ;;  %v860_v32 = vunpack.c.l.s8.bf16 %v352_v8  ;;  %v864_v19 = vunpack.c.h.s8.bf16 %v352_v8 }
 0x22c   :  { %1329 = vmatprep.subr.bf16.mxu0 %v946_v9  ;;  %v981_v9 = vunpack.c.h.s8.bf16 %v409_v2  ;;  %v986_v11 = vunpack.c.l.s8.bf16 %v414_v7  ;;  %v990_v18 = vunpack.c.h.s8.bf16 %v414_v7  ;;  %v1796_v2 = vld [vmem:[#allocation6 + $0x38] sm:$0xff] }
 0x22d   :  { %v372_v7 = vld [vmem:[#allocation4 + $0x798] sm:$0xff] }
 0x22e   :  { %1617 = vmatpush1.bf16.msra.mxu1 %v819_v14  ;;  %v351_v14 = vld [vmem:[#allocation4 + $0x6f0] sm:$0xff] }
 0x22f   :  { %1330 = vmatpush1.bf16.msra.mxu0 %v945_v13  ;;  %1618 = vmatprep.subr.bf16.mxu1 %v824_v16  ;;  %v413_v13 = vld [vmem:[#allocation4 + $0x8e0] sm:$0xff]  ;;  %v859_v16 = vunpack.c.l.s8.bf16 %v351_v14 }
 0x230   :  { %1331 = vmatprep.subr.bf16.mxu0 %v950_v15  ;;  %v985_v15 = vunpack.c.l.s8.bf16 %v413_v13 }
 0x232   :  { %1619 = vmatpush1.bf16.msra.mxu1 %v823_v21  ;;  %v989_v21 = vunpack.c.h.s8.bf16 %v413_v13  ;;  %v1798_v13 = vld [vmem:[#allocation6 + $0x48] sm:$0xff] }
 0x233   :  { %1332 = vmatpush1.bf16.msra.mxu0 %v949_v20  ;;  %1620 = vmatprep.subr.bf16.mxu1 %v828_v23  ;;  %v356_v20 = vld [vmem:[#allocation4 + $0x718] sm:$0xff]  ;;  %v109_v23 = vld [vmem:[#allocation2 + $0x80] sm:$0xff] }
 0x234   :  { %1333 = vmatprep.subr.bf16.mxu0 %v954_v41  ;;  %v863_v41 = vunpack.c.h.s8.bf16 %v351_v14  ;;  %v868_v25 = vunpack.c.l.s8.bf16 %v356_v20 }
 0x236   :  { %1621 = vmatpush1.bf16.msra.mxu1 %v827_v27  ;;  %v867_v27 = vunpack.c.l.s8.bf16 %v355_v55 }
 0x237   :  { %1334 = vmatpush1.bf16.msra.mxu0 %v953_v26  ;;  %1622 = vmatprep.subr.bf16.mxu1 %v832_v29  ;;  %v2496_v26 = vpack.c.bf16 %v109_v23, %v109_v23  ;;  %v360_v29 = vld [vmem:[#allocation4 + $0x738] sm:$0xff]  ;;  %v1840_v23 = vunpack.c.h.s8.bf16 %v1798_v13 }
 0x238   :  { %1335 = vmatprep.subr.bf16.mxu0 %v958_v28  ;;  %v872_v28 = vunpack.c.h.s8.bf16 %v356_v20  ;;  %v876_v39 = vunpack.c.l.s8.bf16 %v360_v29  ;;  %v880_v44 = vunpack.c.h.s8.bf16 %v360_v29  ;;  %v376_v20 = vld [vmem:[#allocation4 + $0x7b8] sm:$0xff] }
 0x23a   :  { %1623 = vmatpush1.bf16.msra.mxu1 %v831_v34  ;;  %v1822_v34 = vunpack.c.l.s8.bf16 %v1790_v31 }
 0x23b   :  { %1336 = vmatpush1.bf16.msra.mxu0 %v957_v33  ;;  %1624 = vmatprep.subr.bf16.mxu1 %v836_v38  ;;  %v871_v33 = vunpack.c.h.s8.bf16 %v355_v55  ;;  %v1824_v38 = vunpack.c.h.s8.bf16 %v1790_v31  ;;  %v375_v55 = vld [vmem:[#allocation4 + $0x7b0] sm:$0xff] }
 0x23c   :  { %1337 = vmatprep.subr.bf16.mxu0 %v962_v35  ;;  %v1821_v35 = vunpack.c.l.s8.bf16 %v1789_v37  ;;  %v907_v29 = vunpack.c.l.s8.bf16 %v375_v55 }
 0x23e   :  { %1625 = vmatpush1.bf16.msra.mxu1 %v835_v42  ;;  %v1823_v42 = vunpack.c.h.s8.bf16 %v1789_v37  ;;  %v1799_v37 = vld [vmem:[#allocation6 + $0x50] sm:$0xff] }
 0x23f   :  { %1338 = vmatpush1.bf16.msra.mxu0 %v961_v46  ;;  %1626 = vmatprep.subr.bf16.mxu1 %v840_v43  ;;  %v1792_v46 = vld [vmem:[#allocation6 + $0x18] sm:$0xff]  ;;  %v1791_v43 = vld [vmem:[#allocation6 + $0x10] sm:$0xff] }
 0x240   :  { %1339 = vmatprep.subr.bf16.mxu0 %v966_v1  ;;  %v875_v1 = vunpack.c.l.s8.bf16 %v359_v40  ;;  %v1827_v53 = vunpack.c.h.s8.bf16 %v1791_v43 }
 0x242   :  { %1627 = vmatpush1.bf16.msra.mxu1 %v839_v49  ;;  %v1828_v49 = vunpack.c.h.s8.bf16 %v1792_v46 }
 0x243   :  { %1340 = vmatpush1.bf16.msra.mxu0 %v965_v48  ;;  %1628 = vmatprep.subr.bf16.mxu1 %v844_v52  ;;  %v879_v48 = vunpack.c.h.s8.bf16 %v359_v40  ;;  %v363_v52 = vld [vmem:[#allocation4 + $0x750] sm:$0xff] }
 0x244   :  { %1341 = vmatprep.subr.bf16.mxu0 %v970_v50  ;;  %v884_v50 = vunpack.c.l.s8.bf16 %v364_v45 }
 0x246   :  { %1629 = vmatpush1.bf16.msra.mxu1 %v843_v56  ;;  %v1830_v56 = vunpack.c.l.s8.bf16 %v1794_v36 }
 0x247   :  { %1342 = vmatpush1.bf16.msra.mxu0 %v969_v54  ;;  %1630 = vmatprep.subr.bf16.mxu1 %v848_v58  ;;  %v883_v54 = vunpack.c.l.s8.bf16 %v363_v52  ;;  %v888_v58 = vunpack.c.h.s8.bf16 %v364_v45 }
 0x248   :  { %1343 = vmatprep.subr.bf16.mxu0 %v974_v57  ;;  %v1793_v57 = vld [vmem:[#allocation6 + $0x20] sm:$0xff] }
 0x249   :  { %v1829_v60 = vunpack.c.l.s8.bf16 %v1793_v57  ;;  %v1831_v3 = vunpack.c.h.s8.bf16 %v1793_v57 }
 0x24a   :  { %1631 = vmatpush1.bf16.msra.mxu1 %v847_v62  ;;  %v1832_v62 = vunpack.c.h.s8.bf16 %v1794_v36 }
 0x24b   :  { %1344 = vmatpush1.bf16.msra.mxu0 %v973_v61  ;;  %1632 = vmatprep.subr.bf16.mxu1 %v852_v0  ;;  %v887_v61 = vunpack.c.h.s8.bf16 %v363_v52  ;;  %v367_v0 = vld [vmem:[#allocation4 + $0x770] sm:$0xff] }
 0x24c   :  { %1345 = vmatprep.subr.bf16.mxu0 %v978_v63  ;;  %v892_v63 = vunpack.c.l.s8.bf16 %v368_v22  ;;  %v383_v52 = vld [vmem:[#allocation4 + $0x7f0] sm:$0xff] }
 0x24d   :  { %v923_v36 = vunpack.c.l.s8.bf16 %v383_v52 }
 0x24e   :  { %1633 = vmatpush1.bf16.msra.mxu1 %v851_v4  ;;  %v1834_v4 = vunpack.c.l.s8.bf16 %v1796_v2 }
 0x24f   :  { %1346 = vmatpush1.bf16.msra.mxu0 %v977_v24  ;;  %1634 = vmatprep.subr.bf16.mxu1 %v856_v6  ;;  %v891_v24 = vunpack.c.l.s8.bf16 %v367_v0  ;;  %v896_v6 = vunpack.c.h.s8.bf16 %v368_v22 }
 0x250   :  { %1347 = vmatprep.subr.bf16.mxu0 %v982_v5  ;;  %v1795_v5 = vld [vmem:[#allocation6 + $0x30] sm:$0xff] }
 0x251   :  { %v1833_v8 = vunpack.c.l.s8.bf16 %v1795_v5  ;;  %v1835_v14 = vunpack.c.h.s8.bf16 %v1795_v5 }
 0x252   :  { %1635 = vmatpush1.bf16.msra.mxu1 %v855_v10  ;;  %v1836_v10 = vunpack.c.h.s8.bf16 %v1796_v2 }
 0x253   :  { %1348 = vmatpush1.bf16.msra.mxu0 %v981_v9  ;;  %1636 = vmatprep.subr.bf16.mxu1 %v860_v32  ;;  %v895_v9 = vunpack.c.h.s8.bf16 %v367_v0  ;;  %v371_v32 = vld [vmem:[#allocation4 + $0x790] sm:$0xff] }
 0x254   :  { %1349 = vmatprep.subr.bf16.mxu0 %v986_v11  ;;  %v900_v11 = vunpack.c.l.s8.bf16 %v372_v7  ;;  %v391_v0 = vld [vmem:[#allocation4 + $0x830] sm:$0xff] }
 0x255   :  { %v939_v2 = vunpack.c.l.s8.bf16 %v391_v0 }
 0x256   :  { %1637 = vmatpush1.bf16.msra.mxu1 %v859_v16  ;;  %v1838_v16 = vunpack.c.l.s8.bf16 %v1798_v13 }
 0x257   :  { %1350 = vmatpush1.bf16.msra.mxu0 %v985_v15  ;;  %1638 = vmatprep.subr.bf16.mxu1 %v864_v19  ;;  %v899_v15 = vunpack.c.l.s8.bf16 %v371_v32  ;;  %v904_v19 = vunpack.c.h.s8.bf16 %v372_v7 }
 0x258   :  { %1351 = vmatprep.subr.bf16.mxu0 %v990_v18  ;;  %v1797_v18 = vld [vmem:[#allocation6 + $0x40] sm:$0xff] }
 0x25a   :  { %1639 = vmatpush1.bf16.msra.mxu1 %v863_v41  ;;  %v903_v41 = vunpack.c.h.s8.bf16 %v371_v32 }
 0x25b   :  { %1352 = vmatpush1.bf16.msra.mxu0 %v989_v21  ;;  %1649 = vmatprep.subr.bf16.mxu1 %v868_v25  ;;  %v1837_v21 = vunpack.c.l.s8.bf16 %v1797_v18  ;;  %v908_v25 = vunpack.c.l.s8.bf16 %v376_v20 }
 0x25c   :  { %1885 = vmatprep.subr.bf16.mxu0 %v1822_v34  ;;  %v380_v34 = vld [vmem:[#allocation4 + $0x7d8] sm:$0xff] }
 0x25d   :  { %1641 = vmatmul.mubr.bf16.vlgmr.msra.gmra.mrb[4].mxu1 %v2480_v30  ;;  %v1826_v30 = vunpack.c.l.s8.bf16 %v1792_v46  ;;  %v916_v40 = vunpack.c.l.s8.bf16 %v380_v34  ;;  %v379_v46 = vld [vmem:[#allocation4 + $0x7d0] sm:$0xff]  ;;  %v920_v45 = vunpack.c.h.s8.bf16 %v380_v34 }
 0x25e   :  { %1354 = vmatmul.mubr.bf16.vlgmr.msra.gmra.mrb[0].mxu0 %v2496_v26  ;;  %1650 = vmatpush1.bf16.msra.mxu1 %v867_v27  ;;  %v1800_v27 = vld [vmem:[#allocation6 + $0x58] sm:$0xff] }
 0x25f   :  { %1681 = vmatprep.mubr.bf16.mxu1 %v2482_v12  ;;  %1651 = vmatprep.subr.bf16.mxu1 %v872_v28  ;;  %v1825_v12 = vunpack.c.l.s8.bf16 %v1791_v43  ;;  %v1839_v28 = vunpack.c.h.s8.bf16 %v1797_v18  ;;  %v1842_v31 = vunpack.c.l.s8.bf16 %v1800_v27  ;;  %v1803_v18 = vld [vmem:[#allocation6 + $0x70] sm:$0xff] }
 0x260   :  { %1886 = vmatpush1.bf16.msra.mxu0 %v1821_v35  ;;  %v1841_v35 = vunpack.c.l.s8.bf16 %v1799_v37 }
 0x261   :  { %1887 = vmatprep.subr.bf16.mxu0 %v1824_v38  ;;  %v911_v38 = vunpack.c.h.s8.bf16 %v375_v55  ;;  %v1851_v55 = vunpack.c.h.s8.bf16 %v1803_v18 }
 0x262   :  { %1652 = vmatpush1.bf16.msra.mxu1 %v871_v33  ;;  %v912_v33 = vunpack.c.h.s8.bf16 %v376_v20  ;;  %v1849_v20 = vunpack.c.l.s8.bf16 %v1803_v18  ;;  %v2002_v18 = vld [vmem:[#allocation7 + $0x28] sm:$0xff] }
 0x263   :  { %1653 = vmatprep.subr.bf16.mxu1 %v876_v39  ;;  %v1844_v39 = vunpack.c.h.s8.bf16 %v1800_v27 }
 0x264   :  { %1888 = vmatpush1.bf16.msra.mxu0 %v1823_v42  ;;  %v2501_v42 = vld [vmem:[#allocation6 + $0x68] sm:$0xff] }
 0x265   :  { %1889 = vmatprep.subr.bf16.mxu0 %v1826_v30  ;;  %v915_v30 = vunpack.c.l.s8.bf16 %v379_v46  ;;  %v1846_v43 = vunpack.c.l.s8.bf16 %v2501_v42 }
 0x266   :  { %1654 = vmatpush1.bf16.msra.mxu1 %v875_v1  ;;  %v1843_v1 = vunpack.c.h.s8.bf16 %v1799_v37 }
 0x267   :  { %1655 = vmatprep.subr.bf16.mxu1 %v880_v44  ;;  %v1801_v44 = vld [vmem:[#allocation6 + $0x60] sm:$0xff] }
 0x268   :  { %1890 = vmatpush1.bf16.msra.mxu0 %v1825_v12  ;;  %v384_v12 = vld [vmem:[#allocation4 + $0x7f8] sm:$0xff]  ;;  %v1847_v32 = vunpack.c.h.s8.bf16 %v1801_v44 }
 0x269   :  { %1891 = vmatprep.subr.bf16.mxu0 %v1828_v49  ;;  %v919_v49 = vunpack.c.h.s8.bf16 %v379_v46 }
 0x26a   :  { %1656 = vmatpush1.bf16.msra.mxu1 %v879_v48  ;;  %v1845_v48 = vunpack.c.l.s8.bf16 %v1801_v44  ;;  %v416_v44 = vld [vmem:[#allocation4 + $0x8f8] sm:$0xff] }
 0x26b   :  { %1657 = vmatprep.subr.bf16.mxu1 %v884_v50  ;;  %v924_v50 = vunpack.c.l.s8.bf16 %v384_v12 }
 0x26c   :  { %1892 = vmatpush1.bf16.msra.mxu0 %v1827_v53  ;;  %v928_v53 = vunpack.c.h.s8.bf16 %v384_v12  ;;  %v988_v12 = vunpack.c.l.s8.bf16 %v416_v44 }
 0x26d   :  { %1893 = vmatprep.subr.bf16.mxu0 %v1830_v56  ;;  %v927_v56 = vunpack.c.h.s8.bf16 %v383_v52 }
 0x26e   :  { %1658 = vmatpush1.bf16.msra.mxu1 %v883_v54  ;;  %v388_v54 = vld [vmem:[#allocation4 + $0x818] sm:$0xff] }
 0x26f   :  { %1659 = vmatprep.subr.bf16.mxu1 %v888_v58  ;;  %v932_v57 = vunpack.c.l.s8.bf16 %v388_v54  ;;  %v387_v58 = vld [vmem:[#allocation4 + $0x810] sm:$0xff] }
 0x270   :  { %1894 = vmatpush1.bf16.msra.mxu0 %v1829_v60  ;;  %v931_v22 = vunpack.c.l.s8.bf16 %v387_v58  ;;  %v936_v60 = vunpack.c.h.s8.bf16 %v388_v54 }
 0x271   :  { %1895 = vmatprep.subr.bf16.mxu0 %v1832_v62  ;;  %v935_v62 = vunpack.c.h.s8.bf16 %v387_v58  ;;  %v2521_v58 = vld [vmem:[#allocation9] sm:$0xf] }
 0x272   :  { %1660 = vmatpush1.bf16.msra.mxu1 %v887_v61  ;;  %v392_v61 = vld [vmem:[#allocation4 + $0x838] sm:$0xff] }
 0x273   :  { %1661 = vmatprep.subr.bf16.mxu1 %v892_v63  ;;  %v940_v63 = vunpack.c.l.s8.bf16 %v392_v61 }
 0x274   :  { %1896 = vmatpush1.bf16.msra.mxu0 %v1831_v3  ;;  %v944_v3 = vunpack.c.h.s8.bf16 %v392_v61 }
 0x275   :  { %1897 = vmatprep.subr.bf16.mxu0 %v1834_v4  ;;  %v943_v4 = vunpack.c.h.s8.bf16 %v391_v0 }
 0x276   :  { %1662 = vmatpush1.bf16.msra.mxu1 %v891_v24  ;;  %v396_v24 = vld [vmem:[#allocation4 + $0x858] sm:$0xff] }
 0x277   :  { %1663 = vmatprep.subr.bf16.mxu1 %v896_v6  ;;  %v948_v5 = vunpack.c.l.s8.bf16 %v396_v24  ;;  %v395_v6 = vld [vmem:[#allocation4 + $0x850] sm:$0xff] }
 0x278   :  { %1898 = vmatpush1.bf16.msra.mxu0 %v1833_v8  ;;  %v947_v7 = vunpack.c.l.s8.bf16 %v395_v6  ;;  %v400_v8 = vld [vmem:[#allocation4 + $0x878] sm:$0xff] }
 0x279   :  { %1899 = vmatprep.subr.bf16.mxu0 %v1836_v10  ;;  %v399_v10 = vld [vmem:[#allocation4 + $0x870] sm:$0xff] }
 0x27a   :  { %1664 = vmatpush1.bf16.msra.mxu1 %v895_v9  ;;  %v956_v9 = vunpack.c.l.s8.bf16 %v400_v8  ;;  %v955_v13 = vunpack.c.l.s8.bf16 %v399_v10 }
 0x27b   :  { %1665 = vmatprep.subr.bf16.mxu1 %v900_v11  ;;  %v1848_v11 = vunpack.c.h.s8.bf16 %v2501_v42 }
 0x27c   :  { %1900 = vmatpush1.bf16.msra.mxu0 %v1835_v14  ;;  %v1804_v14 = vld [vmem:[#allocation6 + $0x78] sm:$0xff] }
 0x27d   :  { %1901 = vmatprep.subr.bf16.mxu0 %v1838_v16  ;;  %v1850_v16 = vunpack.c.l.s8.bf16 %v1804_v14 }
 0x27e   :  { %1666 = vmatpush1.bf16.msra.mxu1 %v899_v15  ;;  %v960_v15 = vunpack.c.h.s8.bf16 %v400_v8  ;;  %v1805_v8 = vld [vmem:[#allocation6 + $0x80] sm:$0xff] }
 0x27f   :  { %1667 = vmatprep.subr.bf16.mxu1 %v904_v19  ;;  %v404_v19 = vld [vmem:[#allocation4 + $0x898] sm:$0xff] }
 0x280   :  { %1902 = vmatpush1.bf16.msra.mxu0 %v1837_v21  ;;  %v959_v21 = vunpack.c.h.s8.bf16 %v399_v10 }
 0x281   :  { %1903 = vmatprep.subr.bf16.mxu0 %v1840_v23  ;;  %v403_v23 = vld [vmem:[#allocation4 + $0x890] sm:$0xff] }
 0x282   :  { %1668 = vmatpush1.bf16.msra.mxu1 %v903_v41  ;;  %v964_v41 = vunpack.c.l.s8.bf16 %v404_v19  ;;  %v963_v27 = vunpack.c.l.s8.bf16 %v403_v23  ;;  %v967_v37 = vunpack.c.h.s8.bf16 %v403_v23  ;;  %v2015_v23 = vunpack.c.l.s8.bf16 %v2002_v18 }
 0x283   :  { %1669 = vmatprep.subr.bf16.mxu1 %v908_v25  ;;  %v1852_v25 = vunpack.c.h.s8.bf16 %v1804_v14 }
 0x284   :  { %1904 = vmatpush1.bf16.msra.mxu0 %v1839_v28  ;;  %v968_v28 = vunpack.c.h.s8.bf16 %v404_v19  ;;  %v1855_v19 = vunpack.c.h.s8.bf16 %v1805_v8 }
 0x285   :  { %1905 = vmatprep.subr.bf16.mxu0 %v1842_v31  ;;  %v2507_v31 = vld [vmem:[#allocation6 + $0x88] sm:$0xff] }
 0x286   :  { %1670 = vmatpush1.bf16.msra.mxu1 %v907_v29  ;;  %v408_v29 = vld [vmem:[#allocation4 + $0x8b8] sm:$0xff] }
 0x287   :  { %1671 = vmatprep.subr.bf16.mxu1 %v912_v33  ;;  %v1854_v33 = vunpack.c.l.s8.bf16 %v2507_v31  ;;  %v972_v34 = vunpack.c.l.s8.bf16 %v408_v29 }
 0x288   :  { %1906 = vmatpush1.bf16.msra.mxu0 %v1841_v35  ;;  %v407_v35 = vld [vmem:[#allocation4 + $0x8b0] sm:$0xff] }
 0x289   :  { %1907 = vmatprep.subr.bf16.mxu0 %v1844_v39  ;;  %v976_v39 = vunpack.c.h.s8.bf16 %v408_v29  ;;  %v975_v46 = vunpack.c.h.s8.bf16 %v407_v35  ;;  %v1810_v29 = vld [vmem:[#allocation6 + $0xa8] sm:$0xff] }
 0x28a   :  { %1672 = vmatpush1.bf16.msra.mxu1 %v911_v38  ;;  %v971_v38 = vunpack.c.l.s8.bf16 %v407_v35  ;;  %v1809_v35 = vld [vmem:[#allocation6 + $0xa0] sm:$0xff] }
 0x28b   :  { %1673 = vmatprep.subr.bf16.mxu1 %v916_v40  ;;  %v412_v40 = vld [vmem:[#allocation4 + $0x8d8] sm:$0xff] }
 0x28c   :  { %1908 = vmatpush1.bf16.msra.mxu0 %v1843_v1  ;;  %v980_v42 = vunpack.c.l.s8.bf16 %v412_v40  ;;  %v411_v1 = vld [vmem:[#allocation4 + $0x8d0] sm:$0xff] }
 0x28d   :  { %1909 = vmatprep.subr.bf16.mxu0 %v1846_v43  ;;  %v984_v43 = vunpack.c.h.s8.bf16 %v412_v40  ;;  %v2534_v40 = vld [vmem:[#allocation7 + $0x10] sm:$0xff] }
 0x28e   :  { %1674 = vmatpush1.bf16.msra.mxu1 %v915_v30  ;;  %v979_v30 = vunpack.c.l.s8.bf16 %v411_v1 }
 0x28f   :  { %1675 = vmatprep.subr.bf16.mxu1 %v920_v45  ;;  %v983_v45 = vunpack.c.h.s8.bf16 %v411_v1  ;;  %v2009_v1 = vunpack.c.l.s8.bf16 %v2534_v40 }
 0x290   :  { %1910 = vmatpush1.bf16.msra.mxu0 %v1845_v48  ;;  %v415_v48 = vld [vmem:[#allocation4 + $0x8f0] sm:$0xff] }
 0x291   :  { %1911 = vmatprep.subr.bf16.mxu0 %v1848_v11  ;;  %v991_v52 = vunpack.c.h.s8.bf16 %v415_v48  ;;  %v1856_v11 = vunpack.c.h.s8.bf16 %v2507_v31  ;;  %v2016_v31 = vunpack.c.h.s8.bf16 %v2002_v18 }
 0x292   :  { %1676 = vmatpush1.bf16.msra.mxu1 %v919_v49  ;;  %v987_v49 = vunpack.c.l.s8.bf16 %v415_v48 }
 0x293   :  { %1677 = vmatprep.subr.bf16.mxu1 %v924_v50  ;;  %v992_v50 = vunpack.c.h.s8.bf16 %v416_v44  ;;  %v1863_v44 = vunpack.c.h.s8.bf16 %v1809_v35 }
 0x294   :  { %1912 = vmatpush1.bf16.msra.mxu0 %v1847_v32  ;;  %v2001_v32 = vld [vmem:[#allocation7 + $0x20] sm:$0xff] }
 0x295   :  { %1913 = vmatprep.subr.bf16.mxu0 %v1850_v16  ;;  %v2013_v14 = vunpack.c.l.s8.bf16 %v2001_v32  ;;  %v2014_v16 = vunpack.c.h.s8.bf16 %v2001_v32 }
 0x296   :  { %1678 = vmatpush1.bf16.msra.mxu1 %v923_v36  ;;  %v1732_v36 = vlaneseq }
 0x297   :  { %1679 = vmatprep.subr.bf16.mxu1 %v928_v53 }
 0x298   :  { %1914 = vmatpush1.bf16.msra.mxu0 %v1849_v20  ;;  %v2511_v53 = vshrl.u32 %v1732_v36, 7 }
 0x299   :  { %1915 = vmatprep.subr.bf16.mxu0 %v1852_v25  ;;  %v1998_v25 = vld [vmem:[#allocation7 + $0x8] sm:$0xff] }
 0x29a   :  { %1680 = vmatpush1.bf16.msra.mxu1 %v927_v56  ;;  %v2514_v54 = vsub.s32 0, %v2511_v53  ;;  %v2516_v56 = vld [vmem:[#allocation9 + $0x9] sm:$0xf] }
 0x29b   :  { %1690 = vmatprep.subr.bf16.mxu1 %v932_v57  ;;  %v2519_v57 = vsub.s32 1, %v2511_v53 }
 0x29c   :  { %1916 = vmatpush1.bf16.msra.mxu0 %v1851_v55 }
 0x29d   :  { %1682 = vmatmul.mubr.bf16.vlgmr.msra.gmra.mrb[4].mxu1 %v2488_v51  ;;  %v952_v51 = vunpack.c.h.s8.bf16 %v396_v24  ;;  %1926 = vmatprep.subr.bf16.mxu0 %v1854_v33 }
 0x29e   :  { %1691 = vmatpush1.bf16.msra.mxu1 %v931_v22  ;;  %1722 = vmatprep.mubr.bf16.mxu1 %v2490_v59  ;;  %v951_v59 = vunpack.c.h.s8.bf16 %v395_v6  ;;  %v1735_v22 = vrot.slane %v2516_v56, %v2514_v54 }
 0x29f   :  { %1692 = vmatprep.subr.bf16.mxu1 %v936_v60 }
 0x2a2   :  { %1693 = vmatpush1.bf16.msra.mxu1 %v935_v62  ;;  %v1760_v62 = vrot.slane %v2521_v58, %v2514_v54 }
 0x2a3   :  { %1694 = vmatprep.subr.bf16.mxu1 %v940_v63 }
 0x2a6   :  { %1695 = vmatpush1.bf16.msra.mxu1 %v939_v2  ;;  %v1764_v2 = vrot.slane %v2521_v58, %v2519_v57 }
 0x2a7   :  { %1696 = vmatprep.subr.bf16.mxu1 %v944_v3 }
 0x2aa   :  { %1697 = vmatpush1.bf16.msra.mxu1 %v943_v4 }
 0x2ab   :  { %1698 = vmatprep.subr.bf16.mxu1 %v948_v5 }
 0x2ae   :  { %1699 = vmatpush1.bf16.msra.mxu1 %v947_v7 }
 0x2af   :  { %1700 = vmatprep.subr.bf16.mxu1 %v952_v51 }
 0x2b2   :  { %1701 = vmatpush1.bf16.msra.mxu1 %v951_v59 }
 0x2b3   :  { %1702 = vmatprep.subr.bf16.mxu1 %v956_v9 }
 0x2b6   :  { %1703 = vmatpush1.bf16.msra.mxu1 %v955_v13  ;;  %v1997_v13 = vld [vmem:[#allocation7] sm:$0xff] }
 0x2b7   :  { %1704 = vmatprep.subr.bf16.mxu1 %v960_v15  ;;  %v2005_v15 = vunpack.c.l.s8.bf16 %v1997_v13 }
 0x2ba   :  { %1705 = vmatpush1.bf16.msra.mxu1 %v959_v21  ;;  %v1807_v21 = vld [vmem:[#allocation6 + $0x90] sm:$0xff] }
 0x2bb   :  { %1706 = vmatprep.subr.bf16.mxu1 %v964_v41  ;;  %v2006_v41 = vunpack.c.h.s8.bf16 %v1997_v13  ;;  %v1857_v55 = vunpack.c.l.s8.bf16 %v1807_v21  ;;  %v1859_v33 = vunpack.c.h.s8.bf16 %v1807_v21  ;;  %v1742_v13 = vsub.s32 2, %v2511_v53 }
 0x2be   :  { %1707 = vmatpush1.bf16.msra.mxu1 %v963_v27 }
 0x2bf   :  { %1708 = vmatprep.subr.bf16.mxu1 %v968_v28  ;;  %v2007_v28 = vunpack.c.l.s8.bf16 %v1998_v25 }
 0x2c2   :  { %1709 = vmatpush1.bf16.msra.mxu1 %v967_v37  ;;  %v2003_v37 = vld [vmem:[#allocation7 + $0x30] sm:$0xff] }
 0x2c3   :  { %1710 = vmatprep.subr.bf16.mxu1 %v972_v34  ;;  %v1862_v34 = vunpack.c.l.s8.bf16 %v1810_v29 }
 0x2c6   :  { %1711 = vmatpush1.bf16.msra.mxu1 %v971_v38  ;;  %v2008_v38 = vunpack.c.h.s8.bf16 %v1998_v25 }
 0x2c7   :  { %1712 = vmatprep.subr.bf16.mxu1 %v976_v39  ;;  %v2017_v39 = vunpack.c.l.s8.bf16 %v2003_v37 }
 0x2ca   :  { %1713 = vmatpush1.bf16.msra.mxu1 %v975_v46  ;;  %v1861_v46 = vunpack.c.l.s8.bf16 %v1809_v35 }
 0x2cb   :  { %1714 = vmatprep.subr.bf16.mxu1 %v980_v42  ;;  %v1864_v42 = vunpack.c.h.s8.bf16 %v1810_v29 }
 0x2ce   :  { %1715 = vmatpush1.bf16.msra.mxu1 %v979_v30  ;;  %v1812_v30 = vld [vmem:[#allocation6 + $0xb8] sm:$0xff] }
 0x2cf   :  { %1716 = vmatprep.subr.bf16.mxu1 %v984_v43  ;;  %v2018_v43 = vunpack.c.h.s8.bf16 %v2003_v37  ;;  %v2004_v37 = vld [vmem:[#allocation7 + $0x38] sm:$0xff] }
 0x2d0   :  { %v2020_v35 = vunpack.c.h.s8.bf16 %v2004_v37 }
 0x2d2   :  { %1717 = vmatpush1.bf16.msra.mxu1 %v983_v45  ;;  %v1866_v45 = vunpack.c.l.s8.bf16 %v1812_v30 }
 0x2d3   :  { %1718 = vmatprep.subr.bf16.mxu1 %v988_v12  ;;  %v1811_v12 = vld [vmem:[#allocation6 + $0xb0] sm:$0xff] }
 0x2d4   :  { %v1865_v48 = vunpack.c.l.s8.bf16 %v1811_v12 }
 0x2d6   :  { %1719 = vmatpush1.bf16.msra.mxu1 %v987_v49  ;;  %v1868_v49 = vunpack.c.h.s8.bf16 %v1812_v30 }
 0x2d7   :  { %1720 = vmatprep.subr.bf16.mxu1 %v992_v50  ;;  %v1814_v50 = vld [vmem:[#allocation6 + $0xc8] sm:$0xff] }
 0x2d8   :  { %v1870_v36 = vunpack.c.l.s8.bf16 %v1814_v50 }
 0x2da   :  { %1721 = vmatpush1.bf16.msra.mxu1 %v991_v52  ;;  %v1867_v52 = vunpack.c.h.s8.bf16 %v1811_v12 }
 0x2db   :  { %2105 = vmatprep.subr.bf16.mxu1 %v2013_v14  ;;  %v1743_v14 = vrot.slane %v2516_v56, %v1742_v13 }
 0x2dd   :  { %1723 = vmatmul.mubr.bf16.vlgmr.msra.gmra.mrb[4].mxu1 %v2496_v26  ;;  %v1739_v26 = vrot.slane %v2516_v56, %v2519_v57 }
 0x2de   :  { %2106 = vmatpush3.bf16.msra.mxu1 %v2005_v15 }
 0x2df   :  { %2107 = vmatprep.subr.bf16.mxu1 %v2014_v16  ;;  %v1768_v16 = vrot.slane %v2521_v58, %v1742_v13 }
 0x2e2   :  { %2108 = vmatpush3.bf16.msra.mxu1 %v2006_v41 }
 0x2e3   :  { %2109 = vmatprep.subr.bf16.mxu1 %v2015_v23 }
 0x2e6   :  { %2110 = vmatpush3.bf16.msra.mxu1 %v2007_v28 }
 0x2e7   :  { %2111 = vmatprep.subr.bf16.mxu1 %v2016_v31 }
 0x2ea   :  { %2112 = vmatpush3.bf16.msra.mxu1 %v2008_v38 }
 0x2eb   :  { %2113 = vmatprep.subr.bf16.mxu1 %v2017_v39  ;;  %v91_v39 = vld [vmem:[#allocation9 + $0xd] sm:$0x3] }
 0x2ee   :  { %2114 = vmatpush3.bf16.msra.mxu1 %v2009_v1  ;;  %v1975_v1 = vrot.slane %v91_v39, %v2519_v57 }
 0x2ef   :  { %2115 = vmatprep.subr.bf16.mxu1 %v2018_v43 }
 0x331   :  { %v1355_v60 = vpop.f32.mrb[0].mxu0 }
 0x332   :  { %v2127_v61 = vadd.f32 %v1355_v60, %v2468_v47  ;;  %v1357_v63 = vpop.f32.mrb[1].mxu0  ;;  %v1853_v47 = vunpack.c.l.s8.bf16 %v1805_v8  ;;  %v1820_v8 = vld [vmem:[#allocation6 + $0xf8] sm:$0xff] }
 0x333   :  { %v2128_v0 = vadd.f32 %v1357_v63, %v2470_v17  ;;  %v1359_v3 = vpop.f32.mrb[2].mxu0  ;;  %v1808_v17 = vld [vmem:[#allocation6 + $0x98] sm:$0xff] }
 0x334   :  { %v1752_v24 = vmul.f32 %v2127_v61, %v1735_v22  ;;  %v1360_v4 = vpop.f32.mrb[3].mxu0  ;;  %v1858_v20 = vunpack.c.l.s8.bf16 %v1808_v17  ;;  %v1860_v27 = vunpack.c.h.s8.bf16 %v1808_v17  ;;  %v1813_v22 = vld [vmem:[#allocation6 + $0xc0] sm:$0xff]  ;;  %v1816_v61 = vld [vmem:[#allocation6 + $0xd8] sm:$0xff]  ;;  %v1746_v17 = vsub.s32 3, %v2511_v53 }
 0x335   :  { %v1753_v5 = vmul.f32 %v2128_v0, %v1739_v26  ;;  %v1869_v60 = vunpack.c.l.s8.bf16 %v1813_v22  ;;  %v1872_v26 = vunpack.c.h.s8.bf16 %v1814_v50  ;;  %v1874_v63 = vunpack.c.l.s8.bf16 %v1816_v61  ;;  %v1815_v0 = vld [vmem:[#allocation6 + $0xd0] sm:$0xff] }
 0x336   :  { %v1777_v6 = vadd.f32 %v1760_v62, %v1752_v24  ;;  %v1871_v62 = vunpack.c.h.s8.bf16 %v1813_v22  ;;  %v1876_v3 = vunpack.c.h.s8.bf16 %v1816_v61  ;;  %v1818_v24 = vld [vmem:[#allocation6 + $0xe8] sm:$0xff]  ;;  %v1875_v4 = vunpack.c.h.s8.bf16 %v1815_v0 }
 0x337   :  { %v1778_v7 = vadd.f32 %v1764_v2, %v1753_v5  ;;  %v1873_v2 = vunpack.c.l.s8.bf16 %v1815_v0  ;;  %v1878_v5 = vunpack.c.l.s8.bf16 %v1818_v24  ;;  %v1747_v15 = vrot.slane %v2516_v56, %v1746_v17 }
 0x338   :  { %v1781_v51 = vmax.f32 %v1777_v6, 0.0  ;;  %v1817_v6 = vld [vmem:[#allocation6 + $0xe0] sm:$0xff]  ;;  %v2010_v56 = vunpack.c.h.s8.bf16 %v2534_v40 }
 0x339   :  { %v1782_v59 = vmax.f32 %v1778_v7, 0.0  ;;  %v1877_v7 = vunpack.c.l.s8.bf16 %v1817_v6 }
 0x33a   :  { %v1785_v10 = vpack.c.bf16 %v1781_v51, %v1781_v51  ;;  %v1880_v51 = vunpack.c.h.s8.bf16 %v1818_v24  ;;  %2116 = vmatpush3.bf16.msra.mxu1 %v2010_v56 }
 0x33b   :  { %v1786_v9 = vpack.c.bf16 %v1782_v59, %v1782_v59  ;;  %v1879_v59 = vunpack.c.h.s8.bf16 %v1817_v6 }
 0x33d   :  { %1917 = vmatprep.mubr.bf16.mxu0 %v1786_v9  ;;  %v1882_v9 = vunpack.c.l.s8.bf16 %v1820_v8 }
 0x33e   :  { %1918 = vmatmul.mubr.bf16.vlgmr.msra.gmra.mrb[4].mxu0 %v1785_v10 }
 0x33f   :  { %1927 = vmatpush1.bf16.msra.mxu0 %v1853_v47  ;;  %v1819_v47 = vld [vmem:[#allocation6 + $0xf0] sm:$0xff] }
 0x340   :  { %1928 = vmatprep.subr.bf16.mxu0 %v1856_v11  ;;  %v1881_v10 = vunpack.c.l.s8.bf16 %v1819_v47  ;;  %v1884_v11 = vunpack.c.h.s8.bf16 %v1820_v8  ;;  %v1883_v32 = vunpack.c.h.s8.bf16 %v1819_v47 }
 0x343   :  { %1929 = vmatpush1.bf16.msra.mxu0 %v1855_v19  ;;  %v1772_v19 = vrot.slane %v2521_v58, %v1746_v17 }
 0x344   :  { %1930 = vmatprep.subr.bf16.mxu0 %v1858_v20 }
 0x347   :  { %1931 = vmatpush1.bf16.msra.mxu0 %v1857_v55 }
 0x348   :  { %1932 = vmatprep.subr.bf16.mxu0 %v1860_v27 }
 0x34b   :  { %1933 = vmatpush1.bf16.msra.mxu0 %v1859_v33  ;;  %v2019_v33 = vunpack.c.l.s8.bf16 %v2004_v37 }
 0x34c   :  { %1934 = vmatprep.subr.bf16.mxu0 %v1862_v34  ;;  %v2000_v34 = vld [vmem:[#allocation7 + $0x18] sm:$0xff] }
 0x34d   :  { %v2011_v58 = vunpack.c.l.s8.bf16 %v2000_v34  ;;  %2117 = vmatprep.subr.bf16.mxu1 %v2019_v33  ;;  %v2012_v38 = vunpack.c.h.s8.bf16 %v2000_v34 }
 0x34f   :  { %1935 = vmatpush1.bf16.msra.mxu0 %v1861_v46  ;;  %2118 = vmatpush3.bf16.msra.mxu1 %v2011_v58  ;;  %v86_v46 = vld [vmem:[#allocation9 + $0x4] sm:$0x3] }
 0x350   :  { %1936 = vmatprep.subr.bf16.mxu0 %v1864_v42  ;;  %2119 = vmatprep.subr.bf16.mxu1 %v2020_v35  ;;  %v1971_v42 = vrot.slane %v91_v39, %v2514_v54  ;;  %v1984_v30 = vrot.slane %v86_v46, %v2514_v54  ;;  %v1988_v43 = vrot.slane %v86_v46, %v2519_v57  ;;  %v2102_v57 = vld [vmem:[#allocation9 + $0x6] ss:$0 sm:$0xff] }
 0x353   :  { %1937 = vmatpush1.bf16.msra.mxu0 %v1863_v44  ;;  %2120 = vmatpush3.bf16.msra.mxu1 %v2012_v38 }
 0x354   :  { %1938 = vmatprep.subr.bf16.mxu0 %v1866_v45 }
 0x357   :  { %1939 = vmatpush1.bf16.msra.mxu0 %v1865_v48 }
 0x358   :  { %1940 = vmatprep.subr.bf16.mxu0 %v1868_v49 }
 0x35b   :  { %1941 = vmatpush1.bf16.msra.mxu0 %v1867_v52 }
 0x35c   :  { %1942 = vmatprep.subr.bf16.mxu0 %v1870_v36 }
 0x35f   :  { %1943 = vmatpush1.bf16.msra.mxu0 %v1869_v60 }
 0x360   :  { %1944 = vmatprep.subr.bf16.mxu0 %v1872_v26 }
 0x363   :  { %1945 = vmatpush1.bf16.msra.mxu0 %v1871_v62  ;;  %v2101_v62 = vld [vmem:[#allocation9 + $0xf] ss:$0 sm:$0xff] }
 0x364   :  { %1946 = vmatprep.subr.bf16.mxu0 %v1874_v63 }
 0x367   :  { %1947 = vmatpush1.bf16.msra.mxu0 %v1873_v2 }
 0x368   :  { %1948 = vmatprep.subr.bf16.mxu0 %v1876_v3 }
 0x36b   :  { %1949 = vmatpush1.bf16.msra.mxu0 %v1875_v4  ;;  %v2103_v4 = vld [vmem:[#allocation9 + $0x7] ss:$0 sm:$0xff] }
 0x36c   :  { %1950 = vmatprep.subr.bf16.mxu0 %v1878_v5 }
 0x36f   :  { %1951 = vmatpush1.bf16.msra.mxu0 %v1877_v7  ;;  %v2104_v7 = vld [vmem:[#allocation9 + $0x8] ss:$0 sm:$0xff] }
 0x370   :  { %1952 = vmatprep.subr.bf16.mxu0 %v1880_v51 }
 0x373   :  { %1953 = vmatpush1.bf16.msra.mxu0 %v1879_v59 }
 0x374   :  { %1954 = vmatprep.subr.bf16.mxu0 %v1882_v9 }
 0x377   :  { %1955 = vmatpush1.bf16.msra.mxu0 %v1881_v10 }
 0x378   :  { %1956 = vmatprep.subr.bf16.mxu0 %v1884_v11 }
 0x37b   :  { %1957 = vmatpush1.bf16.msra.mxu0 %v1883_v32 }
 0x3b0   :  { %v1724_v18 = vpop.f32.mrb[4].mxu1 }
 0x3b1   :  { %v1754_v20 = vmul.f32 %v1743_v14, %v1724_v18  ;;  %v1726_v21 = vpop.f32.mrb[5].mxu1 }
 0x3b2   :  { %v1755_v41 = vmul.f32 %v1747_v15, %v1726_v21  ;;  %v1728_v23 = vpop.f32.mrb[6].mxu1 }
 0x3b3   :  { %v1779_v25 = vadd.f32 %v1768_v16, %v1754_v20  ;;  %v1729_v55 = vpop.f32.mrb[7].mxu1 }
 0x3b4   :  { %v1780_v27 = vadd.f32 %v1772_v19, %v1755_v41 }
 0x3b5   :  { %v1783_v28 = vmax.f32 %v1779_v25, 0.0 }
 0x3b6   :  { %v1784_v29 = vmax.f32 %v1780_v27, 0.0 }
 0x3b7   :  { %v1787_v53 = vpack.c.bf16 %v1783_v28, %v1783_v28 }
 0x3b8   :  { %v1788_v31 = vpack.c.bf16 %v1784_v29, %v1784_v29 }
 0x3ba   :  { %1958 = vmatprep.mubr.bf16.mxu0 %v1788_v31 }
 0x3bb   :  { %1959 = vmatmul.mubr.bf16.vlgmr.msra.gmra.mrb[4].mxu0 %v1787_v53 }
 0x48e   :  { %v1960_v40 = vpop.f32.mrb[4].mxu0 }
 0x48f   :  { %v1978_v44 = vmul.f32 %v1971_v42, %v1960_v40  ;;  %v1962_v45 = vpop.f32.mrb[5].mxu0 }
 0x490   :  { %v1979_v12 = vmul.f32 %v1975_v1, %v1962_v45  ;;  %v1964_v48 = vpop.f32.mrb[6].mxu0 }
 0x491   :  { %v1991_v49 = vadd.f32 %v1984_v30, %v1978_v44  ;;  %v1965_v50 = vpop.f32.mrb[7].mxu0 }
 0x492   :  { %v1992_v52 = vadd.f32 %v1988_v43, %v1979_v12 }
 0x493   :  { %v1993_v36 = vmax.f32 %v1991_v49, 0.0 }
 0x494   :  { %v1994_v22 = vmax.f32 %v1992_v52, 0.0 }
 0x495   :  { %v1995_v26 = vpack.c.bf16 %v1993_v36, %v1993_v36 }
 0x496   :  { %v1996_v60 = vpack.c.bf16 %v1994_v22, %v1994_v22 }
 0x498   :  { %2053 = vmatprep.mubr.bf16.mxu1 %v1996_v60 }
 0x499   :  { %2054 = vmatmul.mubr.bf16.vlgmr.msra.gmra.mrb[8].mxu1 %v1995_v26 }
 0x56c   :  { %v2121_v61 = vpop.f32.mrb[8].mxu1 }
 0x56d   :  { %v2122_v63 = vpop.f32.mrb[9].mxu1 }
 0x56e   :  { %v2123_v54 = vadd.f32 %v2122_v63, %v2121_v61  ;;  %v2124_v0 = vpop.f32.mrb[10].mxu1 }
 0x56f   :  { %v2125_v2 = vpop.f32.mrb[11].mxu1 }
 0x570   :  { %v2067_v3 = vmul.f32 %v2123_v54, %v2101_v62 }
 0x572   :  { %v2074_v24 = vadd.f32 %v2102_v57, %v2067_v3 }
 0x574   :  { %v2075_v5 = vmax.f32 %v2074_v24, 0.0 }
 0x576   :  { %v2082_v6 = vmul.f32 %v2103_v4, %v2075_v5 }
 0x578   :  { %2083 = vadd.xlane.f32.xlu0 %v2082_v6 }
 0x605   :  { %v2084_v51 = vpop.xlane.xlu0 %2083 }
 0x606   :  { %v2091_v8 = vadd.f32 %v2104_v7, %v2084_v51 }
 0x608   :  { %2093 = vst.msk [vmem:[%s2556_s5] sm:$0xff] %vm2092_vm0, %v2091_v8 }
 0x609   :  { %2098 = vsyncpa [#allocation3], 1 }
 0x60a   :  { %2099 = vsyncpa [#allocation5], 1 }
 0x60b   :  { %2100 = vsyncpa [#allocation8], 1 }

</bundles_post_ra>
